<compile_context>
chip_gen: v7x
topology: tpu7x:2x2x1
jax: 0.10.0
libtpu: 0.0.40
codegen_flags: <defaults>
</compile_context>

<pallas_src>
import functools

import jax
import jax.numpy as jnp
from jax import lax
from jax.experimental import pallas as pl
from jax.experimental.pallas import tpu as pltpu


_VMEM = pl.BlockSpec(memory_space=pltpu.MemorySpace.VMEM)

# Packed gate order per direction: PyTorch (i, f, g, o) -> (i, f, o, g); the 0.5 of
# sigmoid(z) = 0.5*(1 + tanh(z/2)) is folded into the i/f/o weight & bias columns.
_GATE_ORDER = (0, 1, 3, 2)
_GATE_SCALE = (0.5, 0.5, 0.5, 1.0)


def _sigm_from_z(z):
    # sigmoid via tanh -> EUP transcendental, no divide (head only; no folded 0.5 there).
    return 0.5 * (jnp.tanh(0.5 * z) + 1.0)


# ------------------------------ fused Pallas kernel ------------------------------ #

def _make_fused_kernel(T, Bp, H, num_layers, num_dirs, softmax_out):
    """Kernel: token ids + packed weights -> model output, fully in VMEM."""
    D = num_dirs
    DH = D * H            # hidden feature width (lane-packed [fwd | bwd])
    DGH = 4 * DH          # packed gate width  ([i_f,i_b,f_f,f_b,o_f,o_b,g_f,g_b])

    def kernel(*refs):
        tok_ref, embproj_ref, whh0_ref = refs[0], refs[1], refs[2]
        n_rest = 3 * (num_layers - 1)
        lstm_refs = refs[3:3 + n_rest]
        w1T_ref, b1_ref, w2T_ref, b2_ref = refs[3 + n_rest:7 + n_rest]
        out_ref = refs[7 + n_rest]

        # ---- hoisted lane constants ------------------------------------------------
        gate_lane = lax.broadcasted_iota(jnp.int32, (1, DGH), 1)
        is_sig = gate_lane < 3 * DH                     # i/f/o lanes
        act_scale = jnp.where(is_sig, 0.5, 1.0)         # sigmoid(z) = 0.5*tanh(z/2)+0.5
        act_shift = jnp.where(is_sig, 0.5, 0.0)         # (z/2 already folded into weights)
        if D == 2:
            fwd_gate_lane = (gate_lane % (2 * H)) < H   # fwd half of every gate block
            h_lane = lax.broadcasted_iota(jnp.int32, (1, DH), 1)
            fwd_h_lane = h_lane < H

        # ---- layer-0 input projection: in-kernel gather as one one-hot MXU matmul ----
        # embproj = Embedding @ W_ih0^T + b0 was folded at pack time, so the gather
        # directly yields the layer-0 gate pre-activations for every timestep.
        embproj = embproj_ref[...]                      # (Vp, DGH)
        Vp = embproj.shape[0]
        ids = tok_ref[...]                              # (T*Bp, 1) int32, time-major
        vocab_lane = lax.broadcasted_iota(jnp.int32, (T * Bp, Vp), 1)
        onehot = (vocab_lane == ids).astype(embproj.dtype)
        xproj = jnp.dot(onehot, embproj,
                        preferred_element_type=jnp.float32).reshape(T, Bp, DGH)

        x = None
        h_last = None
        for layer in range(num_layers):
            if layer > 0:
                wihT = lstm_refs[3 * (layer - 1)][...]          # (DH, DGH)
                bias = lstm_refs[3 * (layer - 1) + 2][...]      # (1, DGH)
                xflat = x.reshape(T * Bp, DH).astype(wihT.dtype)
                xproj = (jnp.dot(xflat, wihT, preferred_element_type=jnp.float32)
                         + bias).reshape(T, Bp, DGH)
            whhT = (whh0_ref if layer == 0 else lstm_refs[3 * (layer - 1) + 1])[...]

            # Step inputs hoisted out of the recurrence (no h/c dependence):
            # forward lanes read time s, backward lanes read time T-1-s.
            if D == 2:
                xin = [jnp.where(fwd_gate_lane, xproj[s], xproj[T - 1 - s])
                       for s in range(T)]
            else:
                xin = [xproj[s] for s in range(T)]

            h = jnp.zeros((Bp, DH), jnp.float32)
            c = jnp.zeros((Bp, DH), jnp.float32)
            step_hs = []
            for s in range(T):                          # static unroll (T small)
                # One (Bp, DH) x (DH, DGH) MXU op feeds all gates of both directions
                # (W_hh^T is block-diagonal across directions).
                pre = xin[s] + jnp.dot(h.astype(whhT.dtype), whhT,
                                       preferred_element_type=jnp.float32)
                t = jnp.tanh(pre)                       # single EUP pass over DGH lanes
                act = t * act_scale + act_shift
                i = act[:, 0 * DH:1 * DH]
                f = act[:, 1 * DH:2 * DH]
                o = act[:, 2 * DH:3 * DH]
                g = act[:, 3 * DH:4 * DH]
                c = f * c + i * g
                h = o * jnp.tanh(c)
                step_hs.append(h)                       # [h_fwd(s) | h_bwd(T-1-s)]

            if layer < num_layers - 1:
                if D == 2:
                    seq = jnp.stack(step_hs, axis=0)           # fwd lanes time-aligned
                    seq_r = jnp.stack(step_hs[::-1], axis=0)   # bwd lanes time-aligned
                    x = jnp.where(fwd_h_lane[None], seq, seq_r)    # (T, Bp, DH)
                else:
                    x = jnp.stack(step_hs, axis=0)
            else:
                if D == 2:
                    # lstm_out[:, -1, :] == [h_fwd(T-1) | h_bwd(T-1)]
                    h_last = jnp.where(fwd_h_lane, step_hs[T - 1], step_hs[0])
                else:
                    h_last = step_hs[T - 1]

        # ---- dense head: Linear -> ReLU -> Linear -> Sigmoid / Softmax ---------------
        w1T = w1T_ref[...]
        h1 = jnp.dot(h_last.astype(w1T.dtype), w1T,
                     preferred_element_type=jnp.float32) + b1_ref[...]
        h1 = jnp.maximum(h1, 0.0)
        w2T = w2T_ref[...]
        y = jnp.dot(h1.astype(w2T.dtype), w2T,
                    preferred_element_type=jnp.float32) + b2_ref[...]
        if softmax_out:
            y = y - jnp.max(y, axis=-1, keepdims=True)
            e = jnp.exp(y)
            out_ref[...] = e / jnp.sum(e, axis=-1, keepdims=True)
        else:
            out_ref[...] = _sigm_from_z(y)

    return kernel


# --------------------------------- parameters ------------------------------------ #

def init_params(key, *, vocab_size, embedding_dim, pad_idx, lstm_hidden_size,
                lstm_num_layers, lstm_bidirectional, ann_output_size, ann_numFirst):
    """PyTorch-layout parameters (same shapes/conventions as the nn.Module)."""
    H = lstm_hidden_size
    D = 2 if lstm_bidirectional else 1
    k_emb, k_lstm, k_ann = jax.random.split(key, 3)

    emb = jax.random.normal(k_emb, (vocab_size, embedding_dim), jnp.float32)
    emb = emb.at[pad_idx].set(0.0)                      # padding_idx row is zero

    scale = 1.0 / float(H) ** 0.5
    layer_keys = jax.random.split(k_lstm, lstm_num_layers)
    lstm = []
    for layer in range(lstm_num_layers):
        in_dim = embedding_dim if layer == 0 else H * D
        dir_keys = jax.random.split(layer_keys[layer], D)
        dirs = []
        for d in range(D):
            k1, k2, k3, k4 = jax.random.split(dir_keys[d], 4)
            dirs.append({
                "w_ih": jax.random.uniform(k1, (4 * H, in_dim), jnp.float32, -scale, scale),
                "w_hh": jax.random.uniform(k2, (4 * H, H), jnp.float32, -scale, scale),
                "b_ih": jax.random.uniform(k3, (4 * H,), jnp.float32, -scale, scale),
                "b_hh": jax.random.uniform(k4, (4 * H,), jnp.float32, -scale, scale),
            })
        lstm.append(dirs)

    # TODO(synk): simpleDenseModel source not provided; approximated as
    #             Linear(in, numFirst) -> ReLU -> Linear(numFirst, out) (num_ann_layers=2).
    ann_in = H * D
    ka, kb, kc, kd = jax.random.split(k_ann, 4)
    s1 = 1.0 / float(ann_in) ** 0.5
    s2 = 1.0 / float(ann_numFirst) ** 0.5
    ann = {
        "w1": jax.random.uniform(ka, (ann_numFirst, ann_in), jnp.float32, -s1, s1),
        "b1": jax.random.uniform(kb, (ann_numFirst,), jnp.float32, -s1, s1),
        "w2": jax.random.uniform(kc, (ann_output_size, ann_numFirst), jnp.float32, -s2, s2),
        "b2": jax.random.uniform(kd, (ann_output_size,), jnp.float32, -s2, s2),
    }
    return {"emb": emb, "lstm": lstm, "ann": ann}


def _pack_dir(w_ih, w_hh, b_ih, b_hh, H):
    """Per-direction packing: gate reorder, transpose, 0.5 fold into i/f/o columns."""
    b = b_ih + b_hh
    wih_cols, whh_cols, b_cols = [], [], []
    for g, s in zip(_GATE_ORDER, _GATE_SCALE):
        rows = slice(g * H, (g + 1) * H)
        wih_cols.append(w_ih[rows].T * s)               # (in, H)
        whh_cols.append(w_hh[rows].T * s)               # (H, H)
        b_cols.append((b[rows] * s)[None, :])           # (1, H)
    return wih_cols, whh_cols, b_cols


def pack_params(params, *, bidirectional, use_bf16_mxu=False):
    """PyTorch-layout params -> fused-kernel layout.

    * Gate columns interleaved per gate across directions ([i_f,i_b,f_f,f_b,o_f,o_b,g_f,g_b]).
    * W_hh^T packed block-diagonally over the lane-packed [fwd|bwd] hidden state.
    * Layer-0 W_ih^T and bias folded into the embedding table (lane-padded vocab).
    * Optionally casts the MXU weight operands to bf16 (biases stay f32).
    """
    D = 2 if bidirectional else 1
    lstm_raw = params["lstm"]
    H = lstm_raw[0][0]["w_hh"].shape[1]
    z = jnp.zeros((H, H), jnp.float32)

    packed_layers = []
    for dirs in lstm_raw:
        per_dir = [_pack_dir(p["w_ih"], p["w_hh"], p["b_ih"], p["b_hh"], H) for p in dirs]
        wih_blocks, whh_blocks, b_blocks = [], [], []
        for k in range(4):
            if D == 2:
                wih_blocks.append(jnp.concatenate(
                    [per_dir[0][0][k], per_dir[1][0][k]], axis=1))
                whh_blocks.append(jnp.concatenate(
                    [jnp.concatenate([per_dir[0][1][k], z], axis=0),
                     jnp.concatenate([z, per_dir[1][1][k]], axis=0)], axis=1))
                b_blocks.append(jnp.concatenate(
                    [per_dir[0][2][k], per_dir[1][2][k]], axis=1))
            else:
                wih_blocks.append(per_dir[0][0][k])
                whh_blocks.append(per_dir[0][1][k])
                b_blocks.append(per_dir[0][2][k])
        packed_layers.append({
            "w_ihT": jnp.concatenate(wih_blocks, axis=1),   # (in,  D*4H)
            "w_hhT": jnp.concatenate(whh_blocks, axis=1),   # (D*H, D*4H)
            "b": jnp.concatenate(b_blocks, axis=1),         # (1,   D*4H)
        })

    # Fold layer 0's input projection (and bias) into the embedding table.
    emb = params["emb"]
    vocab = emb.shape[0]
    embproj = emb @ packed_layers[0]["w_ihT"] + packed_layers[0]["b"]    # (vocab, D*4H)
    Vp = max(128, ((vocab + 127) // 128) * 128)
    if Vp != vocab:
        embproj = jnp.pad(embproj, ((0, Vp - vocab), (0, 0)))

    wdt = jnp.bfloat16 if use_bf16_mxu else jnp.float32
    ann = params["ann"]
    return {
        "embproj": embproj.astype(wdt),
        "whh0": packed_layers[0]["w_hhT"].astype(wdt),
        "layers": [{"w_ihT": p["w_ihT"].astype(wdt),
                    "w_hhT": p["w_hhT"].astype(wdt),
                    "b": p["b"]} for p in packed_layers[1:]],
        "w1T": ann["w1"].T.astype(wdt),
        "b1": ann["b1"][None, :],
        "w2T": ann["w2"].T.astype(wdt),
        "b2": ann["b2"][None, :],
    }


# ------------------------------------ wrapper ------------------------------------ #

@functools.partial(jax.jit, static_argnames=("bidirectional",))
def lstm_ann_forward(token_ids, packed, *, bidirectional):
    """token_ids: (B, T) int32. Returns (B, ann_output_size) float32."""
    B, T = token_ids.shape
    D = 2 if bidirectional else 1
    H = packed["whh0"].shape[0] // D
    num_layers = 1 + len(packed["layers"])
    DH, DGH = D * H, D * 4 * H
    Vp = packed["embproj"].shape[0]
    NF = packed["w1T"].shape[1]
    out_dim = packed["w2T"].shape[1]

    # f32 state wants 8-row groups; bf16 MXU operands pack 16 rows per sublane group.
    rows = 16 if packed["whh0"].dtype == jnp.bfloat16 else 8
    Bp = ((B + rows - 1) // rows) * rows

    # Tiny integer prep only; the gather + projection happen inside the kernel.
    ids = jnp.transpose(token_ids.astype(jnp.int32))     # (T, B) time-major
    if Bp != B:
        ids = jnp.pad(ids, ((0, 0), (0, Bp - B)))        # padded rows use token 0
    ids = ids.reshape(T * Bp, 1)

    args = [ids, packed["embproj"], packed["whh0"]]
    for lp in packed["layers"]:
        args += [lp["w_ihT"], lp["w_hhT"], lp["b"]]
    args += [packed["w1T"], packed["b1"], packed["w2T"], packed["b2"]]

    kernel = _make_fused_kernel(T, Bp, H, num_layers, D, softmax_out=(out_dim > 1))

    # Scheduling hint for XLA around the custom call.
    flops = 2 * T * Bp * Vp * DGH                                   # one-hot gather matmul
    flops += (num_layers - 1) * 2 * T * Bp * DH * DGH               # input projections
    flops += num_layers * T * 2 * Bp * DH * DGH                     # recurrent matmuls
    flops += 2 * Bp * (DH * NF + NF * out_dim)                      # dense head
    transcendentals = num_layers * T * Bp * (DGH + DH) + Bp * out_dim
    bytes_accessed = sum(int(a.size) * a.dtype.itemsize for a in args) + Bp * out_dim * 4

    out = pl.pallas_call(
        kernel,
        out_shape=jax.ShapeDtypeStruct((Bp, out_dim), jnp.float32),
        in_specs=[_VMEM] * len(args),
        out_specs=_VMEM,
        compiler_params=pltpu.CompilerParams(vmem_limit_bytes=32 * 1024 * 1024),
        cost_estimate=pl.CostEstimate(flops=flops, transcendentals=transcendentals,
                                      bytes_accessed=bytes_accessed),
    )(*args)
    return out[:B]


# ------------------------------- pure-JAX reference ------------------------------- #

def _reference_forward(token_ids, params, *, bidirectional):
    """Faithful f32 re-implementation of the PyTorch module (inference)."""
    emb = jnp.take(params["emb"], token_ids, axis=0)           # (B, T, E)
    x = jnp.transpose(emb, (1, 0, 2)).astype(jnp.float32)      # (T, B, E)
    T, B, _ = x.shape
    D = 2 if bidirectional else 1
    for dirs in params["lstm"]:
        H = dirs[0]["w_hh"].shape[1]
        outs = []
        for d in range(D):
            p = dirs[d]
            wih, whh = p["w_ih"].T, p["w_hh"].T
            b = (p["b_ih"] + p["b_hh"])[None, :]
            xs = x if d == 0 else x[::-1]
            h = jnp.zeros((B, H), jnp.float32)
            c = jnp.zeros((B, H), jnp.float32)
            hs = []
            for t in range(T):
                zg = xs[t] @ wih + h @ whh + b
                i = jax.nn.sigmoid(zg[:, :H])
                f = jax.nn.sigmoid(zg[:, H:2 * H])
                g = jnp.tanh(zg[:, 2 * H:3 * H])
                o = jax.nn.sigmoid(zg[:, 3 * H:])
                c = f * c + i * g
                h = o * jnp.tanh(c)
                hs.append(h)
            seq = jnp.stack(hs, 0)
            if d == 1:
                seq = seq[::-1]
            outs.append(seq)
        x = jnp.concatenate(outs, -1)
    h_last = x[-1]
    a = params["ann"]
    h1 = jnp.maximum(h_last @ a["w1"].T + a["b1"][None, :], 0.0)
    y = h1 @ a["w2"].T + a["b2"][None, :]
    return jax.nn.sigmoid(y) if a["w2"].shape[0] == 1 else jax.nn.softmax(y, axis=-1)


# -------------------------------------- main -------------------------------------- #

if __name__ == "__main__":
    B, T = 2, 8
    VOCAB, EMB, PAD = 50, 16, 0
    H, NUM_LAYERS = 32, 2
    NUM_FIRST = 64

    key = jax.random.PRNGKey(0)
    k_bi, k_uni, k_data = jax.random.split(key, 3)
    token_ids = jax.random.randint(k_data, (B, T), 0, VOCAB, dtype=jnp.int32)

    # --- bidirectional, sigmoid head (the reviewed configuration), f32 MXU path ---
    params = init_params(k_bi, vocab_size=VOCAB, embedding_dim=EMB, pad_idx=PAD,
                         lstm_hidden_size=H, lstm_num_layers=NUM_LAYERS,
                         lstm_bidirectional=True, ann_output_size=1,
                         ann_numFirst=NUM_FIRST)
    ref = jax.block_until_ready(_reference_forward(token_ids, params, bidirectional=True))

    packed = pack_params(params, bidirectional=True)
    out = jax.block_until_ready(lstm_ann_forward(token_ids, packed, bidirectional=True))
    assert out.shape == (B, 1), out.shape
    assert bool(jnp.all(jnp.isfinite(out)))
    assert bool(jnp.allclose(out, ref, atol=1e-5, rtol=1e-4)), (out, ref)

    # --- same model with bf16 MXU operands (v6e/v7x throughput path, f32 state) ---
    packed_bf16 = pack_params(params, bidirectional=True, use_bf16_mxu=True)
    out_bf16 = jax.block_until_ready(
        lstm_ann_forward(token_ids, packed_bf16, bidirectional=True))
    assert out_bf16.shape == (B, 1), out_bf16.shape
    assert bool(jnp.all(jnp.isfinite(out_bf16)))
    assert bool(jnp.allclose(out_bf16, ref, atol=1e-1)), (out_bf16, ref)

    # --- unidirectional, 3-way softmax head (exercises D == 1 and softmax branches) ---
    params_uni = init_params(k_uni, vocab_size=VOCAB, embedding_dim=EMB, pad_idx=PAD,
                             lstm_hidden_size=H, lstm_num_layers=NUM_LAYERS,
                             lstm_bidirectional=False, ann_output_size=3,
                             ann_numFirst=NUM_FIRST)
    ref_uni = jax.block_until_ready(
        _reference_forward(token_ids, params_uni, bidirectional=False))
    packed_uni = pack_params(params_uni, bidirectional=False)
    out_uni = jax.block_until_ready(
        lstm_ann_forward(token_ids, packed_uni, bidirectional=False))
    assert out_uni.shape == (B, 3), out_uni.shape
    assert bool(jnp.all(jnp.isfinite(out_uni)))
    assert bool(jnp.allclose(out_uni, ref_uni, atol=1e-5, rtol=1e-4)), (out_uni, ref_uni)

    print("KERNEL_OK")
</pallas_src>

<mosaic_0001>
module attributes {stable_mosaic.version = 11 : i64} {
  func.func @kernel(%arg0: memref<64x1xi32, #tpu.memory_space<vmem>>, %arg1: memref<128x256xf32, #tpu.memory_space<vmem>>, %arg2: memref<64x256xf32, #tpu.memory_space<vmem>>, %arg3: memref<64x256xf32, #tpu.memory_space<vmem>>, %arg4: memref<64x256xf32, #tpu.memory_space<vmem>>, %arg5: memref<1x256xf32, #tpu.memory_space<vmem>>, %arg6: memref<64x64xf32, #tpu.memory_space<vmem>>, %arg7: memref<1x64xf32, #tpu.memory_space<vmem>>, %arg8: memref<64x1xf32, #tpu.memory_space<vmem>>, %arg9: memref<1x1xf32, #tpu.memory_space<vmem>>, %arg10: memref<8x1xf32, #tpu.memory_space<vmem>>) attributes {dimension_semantics = [], scalar_prefetch = 0 : i64, scratch_operands = 0 : i64, tpu.core_type = #tpu.core_type<tc>} {
    %0 = tpu.iota {dimensions = array<i32: 1>} : vector<1x256xi32>
    %c192_i32 = arith.constant 192 : i32
    %1 = vector.broadcast %c192_i32 : i32 to vector<1x256xi32>
    %2 = arith.cmpi slt, %0, %1 : vector<1x256xi32>
    %cst = arith.constant 5.000000e-01 : f32
    %cst_0 = arith.constant 1.000000e+00 : f32
    %3 = vector.broadcast %cst : f32 to vector<1x256xf32>
    %4 = vector.broadcast %cst_0 : f32 to vector<1x256xf32>
    %5 = arith.select %2, %3, %4 : vector<1x256xi1>, vector<1x256xf32>
    %cst_1 = arith.constant 5.000000e-01 : f32
    %cst_2 = arith.constant 0.000000e+00 : f32
    %6 = vector.broadcast %cst_1 : f32 to vector<1x256xf32>
    %7 = vector.broadcast %cst_2 : f32 to vector<1x256xf32>
    %8 = arith.select %2, %6, %7 : vector<1x256xi1>, vector<1x256xf32>
    %c64_i32 = arith.constant 64 : i32
    %c0_i32 = arith.constant 0 : i32
    %9 = arith.cmpi eq, %c64_i32, %c0_i32 : i32
    %c1_i32 = arith.constant 1 : i32
    %10 = arith.select %9, %c1_i32, %c64_i32 : i32
    %11 = vector.broadcast %10 : i32 to vector<1x256xi32>
    %12 = arith.remsi %0, %11 : vector<1x256xi32>
    %c0_i32_3 = arith.constant 0 : i32
    %13 = vector.broadcast %c0_i32_3 : i32 to vector<1x256xi32>
    %14 = arith.cmpi ne, %12, %13 : vector<1x256xi32>
    %c0_i32_4 = arith.constant 0 : i32
    %15 = vector.broadcast %c0_i32_4 : i32 to vector<1x256xi32>
    %16 = arith.cmpi slt, %12, %15 : vector<1x256xi32>
    %c0_i32_5 = arith.constant 0 : i32
    %17 = arith.cmpi slt, %10, %c0_i32_5 : i32
    %18 = vector.broadcast %17 : i1 to vector<1x256xi1>
    %19 = vector.broadcast %18 : vector<1x256xi1> to vector<1x256xi1>
    %20 = arith.xori %16, %19 : vector<1x256xi1>
    %21 = arith.andi %20, %14 : vector<1x256xi1>
    %22 = vector.broadcast %10 : i32 to vector<1x256xi32>
    %23 = arith.addi %12, %22 : vector<1x256xi32>
    %24 = arith.select %21, %23, %12 : vector<1x256xi1>, vector<1x256xi32>
    %c32_i32 = arith.constant 32 : i32
    %25 = vector.broadcast %c32_i32 : i32 to vector<1x256xi32>
    %26 = arith.cmpi slt, %24, %25 : vector<1x256xi32>
    %27 = tpu.iota {dimensions = array<i32: 1>} : vector<1x64xi32>
    %c32_i32_6 = arith.constant 32 : i32
    %28 = vector.broadcast %c32_i32_6 : i32 to vector<1x64xi32>
    %29 = arith.cmpi slt, %27, %28 : vector<1x64xi32>
    %c0 = arith.constant 0 : index
    %c0_7 = arith.constant 0 : index
    %30 = vector.load %arg1[%c0, %c0_7] : memref<128x256xf32, #tpu.memory_space<vmem>>, vector<128x256xf32>
    %c0_8 = arith.constant 0 : index
    %c0_9 = arith.constant 0 : index
    %31 = vector.load %arg0[%c0_8, %c0_9] : memref<64x1xi32, #tpu.memory_space<vmem>>, vector<64x1xi32>
    %32 = tpu.iota {dimensions = array<i32: 1>} : vector<64x128xi32>
    %33 = vector.broadcast %31 : vector<64x1xi32> to vector<64x128xi32>
    %34 = arith.cmpi eq, %32, %33 : vector<64x128xi32>
    %35 = arith.extui %34 : vector<64x128xi1> to vector<64x128xi32>
    %36 = arith.sitofp %35 : vector<64x128xi32> to vector<64x128xf32>
    %cst_10 = arith.constant dense<0.000000e+00> : vector<64x256xf32>
    %37 = tpu.matmul %36, %30, %cst_10 {dimension_numbers = #tpu.dot_dimension_numbers<[1], [0], [0], [1], [0, 0, 1, 1], [], []>} : vector<64x128xf32>, vector<128x256xf32>, vector<64x256xf32> -> vector<64x256xf32>
    %38 = vector.shape_cast %37 : vector<64x256xf32> to vector<8x8x256xf32>
    %c0_11 = arith.constant 0 : index
    %c0_12 = arith.constant 0 : index
    %39 = vector.load %arg2[%c0_11, %c0_12] : memref<64x256xf32, #tpu.memory_space<vmem>>, vector<64x256xf32>
    %40 = vector.extract_strided_slice %38 {offsets = [0, 0, 0], sizes = [1, 8, 256], strides = [1, 1, 1]} : vector<8x8x256xf32> to vector<1x8x256xf32>
    %41 = vector.shape_cast %40 : vector<1x8x256xf32> to vector<8x256xf32>
    %42 = vector.extract_strided_slice %38 {offsets = [7, 0, 0], sizes = [1, 8, 256], strides = [1, 1, 1]} : vector<8x8x256xf32> to vector<1x8x256xf32>
    %43 = vector.shape_cast %42 : vector<1x8x256xf32> to vector<8x256xf32>
    %44 = vector.shape_cast %26 : vector<1x256xi1> to vector<1x256xi1>
    %45 = vector.broadcast %44 : vector<1x256xi1> to vector<8x256xi1>
    %46 = arith.select %45, %41, %43 : vector<8x256xi1>, vector<8x256xf32>
    %47 = vector.extract_strided_slice %38 {offsets = [1, 0, 0], sizes = [1, 8, 256], strides = [1, 1, 1]} : vector<8x8x256xf32> to vector<1x8x256xf32>
    %48 = vector.shape_cast %47 : vector<1x8x256xf32> to vector<8x256xf32>
    %49 = vector.extract_strided_slice %38 {offsets = [6, 0, 0], sizes = [1, 8, 256], strides = [1, 1, 1]} : vector<8x8x256xf32> to vector<1x8x256xf32>
    %50 = vector.shape_cast %49 : vector<1x8x256xf32> to vector<8x256xf32>
    %51 = vector.shape_cast %26 : vector<1x256xi1> to vector<1x256xi1>
    %52 = vector.broadcast %51 : vector<1x256xi1> to vector<8x256xi1>
    %53 = arith.select %52, %48, %50 : vector<8x256xi1>, vector<8x256xf32>
    %54 = vector.extract_strided_slice %38 {offsets = [2, 0, 0], sizes = [1, 8, 256], strides = [1, 1, 1]} : vector<8x8x256xf32> to vector<1x8x256xf32>
    %55 = vector.shape_cast %54 : vector<1x8x256xf32> to vector<8x256xf32>
    %56 = vector.extract_strided_slice %38 {offsets = [5, 0, 0], sizes = [1, 8, 256], strides = [1, 1, 1]} : vector<8x8x256xf32> to vector<1x8x256xf32>
    %57 = vector.shape_cast %56 : vector<1x8x256xf32> to vector<8x256xf32>
    %58 = vector.shape_cast %26 : vector<1x256xi1> to vector<1x256xi1>
    %59 = vector.broadcast %58 : vector<1x256xi1> to vector<8x256xi1>
    %60 = arith.select %59, %55, %57 : vector<8x256xi1>, vector<8x256xf32>
    %61 = vector.extract_strided_slice %38 {offsets = [3, 0, 0], sizes = [1, 8, 256], strides = [1, 1, 1]} : vector<8x8x256xf32> to vector<1x8x256xf32>
    %62 = vector.shape_cast %61 : vector<1x8x256xf32> to vector<8x256xf32>
    %63 = vector.extract_strided_slice %38 {offsets = [4, 0, 0], sizes = [1, 8, 256], strides = [1, 1, 1]} : vector<8x8x256xf32> to vector<1x8x256xf32>
    %64 = vector.shape_cast %63 : vector<1x8x256xf32> to vector<8x256xf32>
    %65 = vector.shape_cast %26 : vector<1x256xi1> to vector<1x256xi1>
    %66 = vector.broadcast %65 : vector<1x256xi1> to vector<8x256xi1>
    %67 = arith.select %66, %62, %64 : vector<8x256xi1>, vector<8x256xf32>
    %68 = vector.extract_strided_slice %38 {offsets = [4, 0, 0], sizes = [1, 8, 256], strides = [1, 1, 1]} : vector<8x8x256xf32> to vector<1x8x256xf32>
    %69 = vector.shape_cast %68 : vector<1x8x256xf32> to vector<8x256xf32>
    %70 = vector.extract_strided_slice %38 {offsets = [3, 0, 0], sizes = [1, 8, 256], strides = [1, 1, 1]} : vector<8x8x256xf32> to vector<1x8x256xf32>
    %71 = vector.shape_cast %70 : vector<1x8x256xf32> to vector<8x256xf32>
    %72 = vector.shape_cast %26 : vector<1x256xi1> to vector<1x256xi1>
    %73 = vector.broadcast %72 : vector<1x256xi1> to vector<8x256xi1>
    %74 = arith.select %73, %69, %71 : vector<8x256xi1>, vector<8x256xf32>
    %75 = vector.extract_strided_slice %38 {offsets = [5, 0, 0], sizes = [1, 8, 256], strides = [1, 1, 1]} : vector<8x8x256xf32> to vector<1x8x256xf32>
    %76 = vector.shape_cast %75 : vector<1x8x256xf32> to vector<8x256xf32>
    %77 = vector.extract_strided_slice %38 {offsets = [2, 0, 0], sizes = [1, 8, 256], strides = [1, 1, 1]} : vector<8x8x256xf32> to vector<1x8x256xf32>
    %78 = vector.shape_cast %77 : vector<1x8x256xf32> to vector<8x256xf32>
    %79 = vector.shape_cast %26 : vector<1x256xi1> to vector<1x256xi1>
    %80 = vector.broadcast %79 : vector<1x256xi1> to vector<8x256xi1>
    %81 = arith.select %80, %76, %78 : vector<8x256xi1>, vector<8x256xf32>
    %82 = vector.extract_strided_slice %38 {offsets = [6, 0, 0], sizes = [1, 8, 256], strides = [1, 1, 1]} : vector<8x8x256xf32> to vector<1x8x256xf32>
    %83 = vector.shape_cast %82 : vector<1x8x256xf32> to vector<8x256xf32>
    %84 = vector.extract_strided_slice %38 {offsets = [1, 0, 0], sizes = [1, 8, 256], strides = [1, 1, 1]} : vector<8x8x256xf32> to vector<1x8x256xf32>
    %85 = vector.shape_cast %84 : vector<1x8x256xf32> to vector<8x256xf32>
    %86 = vector.shape_cast %26 : vector<1x256xi1> to vector<1x256xi1>
    %87 = vector.broadcast %86 : vector<1x256xi1> to vector<8x256xi1>
    %88 = arith.select %87, %83, %85 : vector<8x256xi1>, vector<8x256xf32>
    %89 = vector.extract_strided_slice %38 {offsets = [7, 0, 0], sizes = [1, 8, 256], strides = [1, 1, 1]} : vector<8x8x256xf32> to vector<1x8x256xf32>
    %90 = vector.shape_cast %89 : vector<1x8x256xf32> to vector<8x256xf32>
    %91 = vector.extract_strided_slice %38 {offsets = [0, 0, 0], sizes = [1, 8, 256], strides = [1, 1, 1]} : vector<8x8x256xf32> to vector<1x8x256xf32>
    %92 = vector.shape_cast %91 : vector<1x8x256xf32> to vector<8x256xf32>
    %93 = vector.shape_cast %26 : vector<1x256xi1> to vector<1x256xi1>
    %94 = vector.broadcast %93 : vector<1x256xi1> to vector<8x256xi1>
    %95 = arith.select %94, %90, %92 : vector<8x256xi1>, vector<8x256xf32>
    %cst_13 = arith.constant 0.000000e+00 : f32
    %96 = vector.broadcast %cst_13 : f32 to vector<8x64xf32>
    %cst_14 = arith.constant 0.000000e+00 : f32
    %97 = vector.broadcast %cst_14 : f32 to vector<8x64xf32>
    %cst_15 = arith.constant dense<0.000000e+00> : vector<8x256xf32>
    %98 = tpu.matmul %96, %39, %cst_15 {dimension_numbers = #tpu.dot_dimension_numbers<[1], [0], [0], [1], [0, 0, 1, 1], [], []>} : vector<8x64xf32>, vector<64x256xf32>, vector<8x256xf32> -> vector<8x256xf32>
    %99 = arith.addf %46, %98 : vector<8x256xf32>
    %100 = math.tanh %99 : vector<8x256xf32>
    %101 = vector.broadcast %5 : vector<1x256xf32> to vector<8x256xf32>
    %102 = arith.mulf %100, %101 : vector<8x256xf32>
    %103 = vector.broadcast %8 : vector<1x256xf32> to vector<8x256xf32>
    %104 = arith.addf %102, %103 : vector<8x256xf32>
    %105 = vector.extract_strided_slice %104 {offsets = [0, 0], sizes = [8, 64], strides = [1, 1]} : vector<8x256xf32> to vector<8x64xf32>
    %106 = vector.extract_strided_slice %104 {offsets = [0, 64], sizes = [8, 64], strides = [1, 1]} : vector<8x256xf32> to vector<8x64xf32>
    %107 = vector.extract_strided_slice %104 {offsets = [0, 128], sizes = [8, 64], strides = [1, 1]} : vector<8x256xf32> to vector<8x64xf32>
    %108 = vector.extract_strided_slice %104 {offsets = [0, 192], sizes = [8, 64], strides = [1, 1]} : vector<8x256xf32> to vector<8x64xf32>
    %109 = arith.mulf %106, %97 : vector<8x64xf32>
    %110 = arith.mulf %105, %108 : vector<8x64xf32>
    %111 = arith.addf %109, %110 : vector<8x64xf32>
    %112 = math.tanh %111 : vector<8x64xf32>
    %113 = arith.mulf %107, %112 : vector<8x64xf32>
    %cst_16 = arith.constant dense<0.000000e+00> : vector<8x256xf32>
    %114 = tpu.matmul %113, %39, %cst_16 {dimension_numbers = #tpu.dot_dimension_numbers<[1], [0], [0], [1], [0, 0, 1, 1], [], []>} : vector<8x64xf32>, vector<64x256xf32>, vector<8x256xf32> -> vector<8x256xf32>
    %115 = arith.addf %53, %114 : vector<8x256xf32>
    %116 = math.tanh %115 : vector<8x256xf32>
    %117 = vector.broadcast %5 : vector<1x256xf32> to vector<8x256xf32>
    %118 = arith.mulf %116, %117 : vector<8x256xf32>
    %119 = vector.broadcast %8 : vector<1x256xf32> to vector<8x256xf32>
    %120 = arith.addf %118, %119 : vector<8x256xf32>
    %121 = vector.extract_strided_slice %120 {offsets = [0, 0], sizes = [8, 64], strides = [1, 1]} : vector<8x256xf32> to vector<8x64xf32>
    %122 = vector.extract_strided_slice %120 {offsets = [0, 64], sizes = [8, 64], strides = [1, 1]} : vector<8x256xf32> to vector<8x64xf32>
    %123 = vector.extract_strided_slice %120 {offsets = [0, 128], sizes = [8, 64], strides = [1, 1]} : vector<8x256xf32> to vector<8x64xf32>
    %124 = vector.extract_strided_slice %120 {offsets = [0, 192], sizes = [8, 64], strides = [1, 1]} : vector<8x256xf32> to vector<8x64xf32>
    %125 = arith.mulf %122, %111 : vector<8x64xf32>
    %126 = arith.mulf %121, %124 : vector<8x64xf32>
    %127 = arith.addf %125, %126 : vector<8x64xf32>
    %128 = math.tanh %127 : vector<8x64xf32>
    %129 = arith.mulf %123, %128 : vector<8x64xf32>
    %cst_17 = arith.constant dense<0.000000e+00> : vector<8x256xf32>
    %130 = tpu.matmul %129, %39, %cst_17 {dimension_numbers = #tpu.dot_dimension_numbers<[1], [0], [0], [1], [0, 0, 1, 1], [], []>} : vector<8x64xf32>, vector<64x256xf32>, vector<8x256xf32> -> vector<8x256xf32>
    %131 = arith.addf %60, %130 : vector<8x256xf32>
    %132 = math.tanh %131 : vector<8x256xf32>
    %133 = vector.broadcast %5 : vector<1x256xf32> to vector<8x256xf32>
    %134 = arith.mulf %132, %133 : vector<8x256xf32>
    %135 = vector.broadcast %8 : vector<1x256xf32> to vector<8x256xf32>
    %136 = arith.addf %134, %135 : vector<8x256xf32>
    %137 = vector.extract_strided_slice %136 {offsets = [0, 0], sizes = [8, 64], strides = [1, 1]} : vector<8x256xf32> to vector<8x64xf32>
    %138 = vector.extract_strided_slice %136 {offsets = [0, 64], sizes = [8, 64], strides = [1, 1]} : vector<8x256xf32> to vector<8x64xf32>
    %139 = vector.extract_strided_slice %136 {offsets = [0, 128], sizes = [8, 64], strides = [1, 1]} : vector<8x256xf32> to vector<8x64xf32>
    %140 = vector.extract_strided_slice %136 {offsets = [0, 192], sizes = [8, 64], strides = [1, 1]} : vector<8x256xf32> to vector<8x64xf32>
    %141 = arith.mulf %138, %127 : vector<8x64xf32>
    %142 = arith.mulf %137, %140 : vector<8x64xf32>
    %143 = arith.addf %141, %142 : vector<8x64xf32>
    %144 = math.tanh %143 : vector<8x64xf32>
    %145 = arith.mulf %139, %144 : vector<8x64xf32>
    %cst_18 = arith.constant dense<0.000000e+00> : vector<8x256xf32>
    %146 = tpu.matmul %145, %39, %cst_18 {dimension_numbers = #tpu.dot_dimension_numbers<[1], [0], [0], [1], [0, 0, 1, 1], [], []>} : vector<8x64xf32>, vector<64x256xf32>, vector<8x256xf32> -> vector<8x256xf32>
    %147 = arith.addf %67, %146 : vector<8x256xf32>
    %148 = math.tanh %147 : vector<8x256xf32>
    %149 = vector.broadcast %5 : vector<1x256xf32> to vector<8x256xf32>
    %150 = arith.mulf %148, %149 : vector<8x256xf32>
    %151 = vector.broadcast %8 : vector<1x256xf32> to vector<8x256xf32>
    %152 = arith.addf %150, %151 : vector<8x256xf32>
    %153 = vector.extract_strided_slice %152 {offsets = [0, 0], sizes = [8, 64], strides = [1, 1]} : vector<8x256xf32> to vector<8x64xf32>
    %154 = vector.extract_strided_slice %152 {offsets = [0, 64], sizes = [8, 64], strides = [1, 1]} : vector<8x256xf32> to vector<8x64xf32>
    %155 = vector.extract_strided_slice %152 {offsets = [0, 128], sizes = [8, 64], strides = [1, 1]} : vector<8x256xf32> to vector<8x64xf32>
    %156 = vector.extract_strided_slice %152 {offsets = [0, 192], sizes = [8, 64], strides = [1, 1]} : vector<8x256xf32> to vector<8x64xf32>
    %157 = arith.mulf %154, %143 : vector<8x64xf32>
    %158 = arith.mulf %153, %156 : vector<8x64xf32>
    %159 = arith.addf %157, %158 : vector<8x64xf32>
    %160 = math.tanh %159 : vector<8x64xf32>
    %161 = arith.mulf %155, %160 : vector<8x64xf32>
    %cst_19 = arith.constant dense<0.000000e+00> : vector<8x256xf32>
    %162 = tpu.matmul %161, %39, %cst_19 {dimension_numbers = #tpu.dot_dimension_numbers<[1], [0], [0], [1], [0, 0, 1, 1], [], []>} : vector<8x64xf32>, vector<64x256xf32>, vector<8x256xf32> -> vector<8x256xf32>
    %163 = arith.addf %74, %162 : vector<8x256xf32>
    %164 = math.tanh %163 : vector<8x256xf32>
    %165 = vector.broadcast %5 : vector<1x256xf32> to vector<8x256xf32>
    %166 = arith.mulf %164, %165 : vector<8x256xf32>
    %167 = vector.broadcast %8 : vector<1x256xf32> to vector<8x256xf32>
    %168 = arith.addf %166, %167 : vector<8x256xf32>
    %169 = vector.extract_strided_slice %168 {offsets = [0, 0], sizes = [8, 64], strides = [1, 1]} : vector<8x256xf32> to vector<8x64xf32>
    %170 = vector.extract_strided_slice %168 {offsets = [0, 64], sizes = [8, 64], strides = [1, 1]} : vector<8x256xf32> to vector<8x64xf32>
    %171 = vector.extract_strided_slice %168 {offsets = [0, 128], sizes = [8, 64], strides = [1, 1]} : vector<8x256xf32> to vector<8x64xf32>
    %172 = vector.extract_strided_slice %168 {offsets = [0, 192], sizes = [8, 64], strides = [1, 1]} : vector<8x256xf32> to vector<8x64xf32>
    %173 = arith.mulf %170, %159 : vector<8x64xf32>
    %174 = arith.mulf %169, %172 : vector<8x64xf32>
    %175 = arith.addf %173, %174 : vector<8x64xf32>
    %176 = math.tanh %175 : vector<8x64xf32>
    %177 = arith.mulf %171, %176 : vector<8x64xf32>
    %cst_20 = arith.constant dense<0.000000e+00> : vector<8x256xf32>
    %178 = tpu.matmul %177, %39, %cst_20 {dimension_numbers = #tpu.dot_dimension_numbers<[1], [0], [0], [1], [0, 0, 1, 1], [], []>} : vector<8x64xf32>, vector<64x256xf32>, vector<8x256xf32> -> vector<8x256xf32>
    %179 = arith.addf %81, %178 : vector<8x256xf32>
    %180 = math.tanh %179 : vector<8x256xf32>
    %181 = vector.broadcast %5 : vector<1x256xf32> to vector<8x256xf32>
    %182 = arith.mulf %180, %181 : vector<8x256xf32>
    %183 = vector.broadcast %8 : vector<1x256xf32> to vector<8x256xf32>
    %184 = arith.addf %182, %183 : vector<8x256xf32>
    %185 = vector.extract_strided_slice %184 {offsets = [0, 0], sizes = [8, 64], strides = [1, 1]} : vector<8x256xf32> to vector<8x64xf32>
    %186 = vector.extract_strided_slice %184 {offsets = [0, 64], sizes = [8, 64], strides = [1, 1]} : vector<8x256xf32> to vector<8x64xf32>
    %187 = vector.extract_strided_slice %184 {offsets = [0, 128], sizes = [8, 64], strides = [1, 1]} : vector<8x256xf32> to vector<8x64xf32>
    %188 = vector.extract_strided_slice %184 {offsets = [0, 192], sizes = [8, 64], strides = [1, 1]} : vector<8x256xf32> to vector<8x64xf32>
    %189 = arith.mulf %186, %175 : vector<8x64xf32>
    %190 = arith.mulf %185, %188 : vector<8x64xf32>
    %191 = arith.addf %189, %190 : vector<8x64xf32>
    %192 = math.tanh %191 : vector<8x64xf32>
    %193 = arith.mulf %187, %192 : vector<8x64xf32>
    %cst_21 = arith.constant dense<0.000000e+00> : vector<8x256xf32>
    %194 = tpu.matmul %193, %39, %cst_21 {dimension_numbers = #tpu.dot_dimension_numbers<[1], [0], [0], [1], [0, 0, 1, 1], [], []>} : vector<8x64xf32>, vector<64x256xf32>, vector<8x256xf32> -> vector<8x256xf32>
    %195 = arith.addf %88, %194 : vector<8x256xf32>
    %196 = math.tanh %195 : vector<8x256xf32>
    %197 = vector.broadcast %5 : vector<1x256xf32> to vector<8x256xf32>
    %198 = arith.mulf %196, %197 : vector<8x256xf32>
    %199 = vector.broadcast %8 : vector<1x256xf32> to vector<8x256xf32>
    %200 = arith.addf %198, %199 : vector<8x256xf32>
    %201 = vector.extract_strided_slice %200 {offsets = [0, 0], sizes = [8, 64], strides = [1, 1]} : vector<8x256xf32> to vector<8x64xf32>
    %202 = vector.extract_strided_slice %200 {offsets = [0, 64], sizes = [8, 64], strides = [1, 1]} : vector<8x256xf32> to vector<8x64xf32>
    %203 = vector.extract_strided_slice %200 {offsets = [0, 128], sizes = [8, 64], strides = [1, 1]} : vector<8x256xf32> to vector<8x64xf32>
    %204 = vector.extract_strided_slice %200 {offsets = [0, 192], sizes = [8, 64], strides = [1, 1]} : vector<8x256xf32> to vector<8x64xf32>
    %205 = arith.mulf %202, %191 : vector<8x64xf32>
    %206 = arith.mulf %201, %204 : vector<8x64xf32>
    %207 = arith.addf %205, %206 : vector<8x64xf32>
    %208 = math.tanh %207 : vector<8x64xf32>
    %209 = arith.mulf %203, %208 : vector<8x64xf32>
    %cst_22 = arith.constant dense<0.000000e+00> : vector<8x256xf32>
    %210 = tpu.matmul %209, %39, %cst_22 {dimension_numbers = #tpu.dot_dimension_numbers<[1], [0], [0], [1], [0, 0, 1, 1], [], []>} : vector<8x64xf32>, vector<64x256xf32>, vector<8x256xf32> -> vector<8x256xf32>
    %211 = arith.addf %95, %210 : vector<8x256xf32>
    %212 = math.tanh %211 : vector<8x256xf32>
    %213 = vector.broadcast %5 : vector<1x256xf32> to vector<8x256xf32>
    %214 = arith.mulf %212, %213 : vector<8x256xf32>
    %215 = vector.broadcast %8 : vector<1x256xf32> to vector<8x256xf32>
    %216 = arith.addf %214, %215 : vector<8x256xf32>
    %217 = vector.extract_strided_slice %216 {offsets = [0, 0], sizes = [8, 64], strides = [1, 1]} : vector<8x256xf32> to vector<8x64xf32>
    %218 = vector.extract_strided_slice %216 {offsets = [0, 64], sizes = [8, 64], strides = [1, 1]} : vector<8x256xf32> to vector<8x64xf32>
    %219 = vector.extract_strided_slice %216 {offsets = [0, 128], sizes = [8, 64], strides = [1, 1]} : vector<8x256xf32> to vector<8x64xf32>
    %220 = vector.extract_strided_slice %216 {offsets = [0, 192], sizes = [8, 64], strides = [1, 1]} : vector<8x256xf32> to vector<8x64xf32>
    %221 = arith.mulf %218, %207 : vector<8x64xf32>
    %222 = arith.mulf %217, %220 : vector<8x64xf32>
    %223 = arith.addf %221, %222 : vector<8x64xf32>
    %224 = math.tanh %223 : vector<8x64xf32>
    %225 = arith.mulf %219, %224 : vector<8x64xf32>
    %226 = vector.shape_cast %113 : vector<8x64xf32> to vector<1x8x64xf32>
    %227 = vector.shape_cast %129 : vector<8x64xf32> to vector<1x8x64xf32>
    %228 = vector.shape_cast %145 : vector<8x64xf32> to vector<1x8x64xf32>
    %229 = vector.shape_cast %161 : vector<8x64xf32> to vector<1x8x64xf32>
    %230 = vector.shape_cast %177 : vector<8x64xf32> to vector<1x8x64xf32>
    %231 = vector.shape_cast %193 : vector<8x64xf32> to vector<1x8x64xf32>
    %232 = vector.shape_cast %209 : vector<8x64xf32> to vector<1x8x64xf32>
    %233 = vector.shape_cast %225 : vector<8x64xf32> to vector<1x8x64xf32>
    %234 = tpu.concatenate %226, %227, %228, %229, %230, %231, %232, %233 in 0 : vector<1x8x64xf32>, vector<1x8x64xf32>, vector<1x8x64xf32>, vector<1x8x64xf32>, vector<1x8x64xf32>, vector<1x8x64xf32>, vector<1x8x64xf32>, vector<1x8x64xf32> -> vector<8x8x64xf32>
    %235 = vector.shape_cast %225 : vector<8x64xf32> to vector<1x8x64xf32>
    %236 = vector.shape_cast %209 : vector<8x64xf32> to vector<1x8x64xf32>
    %237 = vector.shape_cast %193 : vector<8x64xf32> to vector<1x8x64xf32>
    %238 = vector.shape_cast %177 : vector<8x64xf32> to vector<1x8x64xf32>
    %239 = vector.shape_cast %161 : vector<8x64xf32> to vector<1x8x64xf32>
    %240 = vector.shape_cast %145 : vector<8x64xf32> to vector<1x8x64xf32>
    %241 = vector.shape_cast %129 : vector<8x64xf32> to vector<1x8x64xf32>
    %242 = vector.shape_cast %113 : vector<8x64xf32> to vector<1x8x64xf32>
    %243 = tpu.concatenate %235, %236, %237, %238, %239, %240, %241, %242 in 0 : vector<1x8x64xf32>, vector<1x8x64xf32>, vector<1x8x64xf32>, vector<1x8x64xf32>, vector<1x8x64xf32>, vector<1x8x64xf32>, vector<1x8x64xf32>, vector<1x8x64xf32> -> vector<8x8x64xf32>
    %244 = vector.shape_cast %29 : vector<1x64xi1> to vector<1x1x64xi1>
    %245 = vector.shape_cast %244 : vector<1x1x64xi1> to vector<1x1x64xi1>
    %246 = vector.broadcast %245 : vector<1x1x64xi1> to vector<8x8x64xi1>
    %247 = arith.select %246, %234, %243 : vector<8x8x64xi1>, vector<8x8x64xf32>
    %c0_23 = arith.constant 0 : index
    %c0_24 = arith.constant 0 : index
    %248 = vector.load %arg3[%c0_23, %c0_24] : memref<64x256xf32, #tpu.memory_space<vmem>>, vector<64x256xf32>
    %c0_25 = arith.constant 0 : index
    %c0_26 = arith.constant 0 : index
    %249 = vector.load %arg5[%c0_25, %c0_26] : memref<1x256xf32, #tpu.memory_space<vmem>>, vector<1x256xf32>
    %250 = vector.shape_cast %247 : vector<8x8x64xf32> to vector<64x64xf32>
    %cst_27 = arith.constant dense<0.000000e+00> : vector<64x256xf32>
    %251 = tpu.matmul %250, %248, %cst_27 {dimension_numbers = #tpu.dot_dimension_numbers<[1], [0], [0], [1], [0, 0, 1, 1], [], []>} : vector<64x64xf32>, vector<64x256xf32>, vector<64x256xf32> -> vector<64x256xf32>
    %252 = vector.broadcast %249 : vector<1x256xf32> to vector<64x256xf32>
    %253 = arith.addf %251, %252 : vector<64x256xf32>
    %254 = vector.shape_cast %253 : vector<64x256xf32> to vector<8x8x256xf32>
    %c0_28 = arith.constant 0 : index
    %c0_29 = arith.constant 0 : index
    %255 = vector.load %arg4[%c0_28, %c0_29] : memref<64x256xf32, #tpu.memory_space<vmem>>, vector<64x256xf32>
    %256 = vector.extract_strided_slice %254 {offsets = [0, 0, 0], sizes = [1, 8, 256], strides = [1, 1, 1]} : vector<8x8x256xf32> to vector<1x8x256xf32>
    %257 = vector.shape_cast %256 : vector<1x8x256xf32> to vector<8x256xf32>
    %258 = vector.extract_strided_slice %254 {offsets = [7, 0, 0], sizes = [1, 8, 256], strides = [1, 1, 1]} : vector<8x8x256xf32> to vector<1x8x256xf32>
    %259 = vector.shape_cast %258 : vector<1x8x256xf32> to vector<8x256xf32>
    %260 = vector.shape_cast %26 : vector<1x256xi1> to vector<1x256xi1>
    %261 = vector.broadcast %260 : vector<1x256xi1> to vector<8x256xi1>
    %262 = arith.select %261, %257, %259 : vector<8x256xi1>, vector<8x256xf32>
    %263 = vector.extract_strided_slice %254 {offsets = [1, 0, 0], sizes = [1, 8, 256], strides = [1, 1, 1]} : vector<8x8x256xf32> to vector<1x8x256xf32>
    %264 = vector.shape_cast %263 : vector<1x8x256xf32> to vector<8x256xf32>
    %265 = vector.extract_strided_slice %254 {offsets = [6, 0, 0], sizes = [1, 8, 256], strides = [1, 1, 1]} : vector<8x8x256xf32> to vector<1x8x256xf32>
    %266 = vector.shape_cast %265 : vector<1x8x256xf32> to vector<8x256xf32>
    %267 = vector.shape_cast %26 : vector<1x256xi1> to vector<1x256xi1>
    %268 = vector.broadcast %267 : vector<1x256xi1> to vector<8x256xi1>
    %269 = arith.select %268, %264, %266 : vector<8x256xi1>, vector<8x256xf32>
    %270 = vector.extract_strided_slice %254 {offsets = [2, 0, 0], sizes = [1, 8, 256], strides = [1, 1, 1]} : vector<8x8x256xf32> to vector<1x8x256xf32>
    %271 = vector.shape_cast %270 : vector<1x8x256xf32> to vector<8x256xf32>
    %272 = vector.extract_strided_slice %254 {offsets = [5, 0, 0], sizes = [1, 8, 256], strides = [1, 1, 1]} : vector<8x8x256xf32> to vector<1x8x256xf32>
    %273 = vector.shape_cast %272 : vector<1x8x256xf32> to vector<8x256xf32>
    %274 = vector.shape_cast %26 : vector<1x256xi1> to vector<1x256xi1>
    %275 = vector.broadcast %274 : vector<1x256xi1> to vector<8x256xi1>
    %276 = arith.select %275, %271, %273 : vector<8x256xi1>, vector<8x256xf32>
    %277 = vector.extract_strided_slice %254 {offsets = [3, 0, 0], sizes = [1, 8, 256], strides = [1, 1, 1]} : vector<8x8x256xf32> to vector<1x8x256xf32>
    %278 = vector.shape_cast %277 : vector<1x8x256xf32> to vector<8x256xf32>
    %279 = vector.extract_strided_slice %254 {offsets = [4, 0, 0], sizes = [1, 8, 256], strides = [1, 1, 1]} : vector<8x8x256xf32> to vector<1x8x256xf32>
    %280 = vector.shape_cast %279 : vector<1x8x256xf32> to vector<8x256xf32>
    %281 = vector.shape_cast %26 : vector<1x256xi1> to vector<1x256xi1>
    %282 = vector.broadcast %281 : vector<1x256xi1> to vector<8x256xi1>
    %283 = arith.select %282, %278, %280 : vector<8x256xi1>, vector<8x256xf32>
    %284 = vector.extract_strided_slice %254 {offsets = [4, 0, 0], sizes = [1, 8, 256], strides = [1, 1, 1]} : vector<8x8x256xf32> to vector<1x8x256xf32>
    %285 = vector.shape_cast %284 : vector<1x8x256xf32> to vector<8x256xf32>
    %286 = vector.extract_strided_slice %254 {offsets = [3, 0, 0], sizes = [1, 8, 256], strides = [1, 1, 1]} : vector<8x8x256xf32> to vector<1x8x256xf32>
    %287 = vector.shape_cast %286 : vector<1x8x256xf32> to vector<8x256xf32>
    %288 = vector.shape_cast %26 : vector<1x256xi1> to vector<1x256xi1>
    %289 = vector.broadcast %288 : vector<1x256xi1> to vector<8x256xi1>
    %290 = arith.select %289, %285, %287 : vector<8x256xi1>, vector<8x256xf32>
    %291 = vector.extract_strided_slice %254 {offsets = [5, 0, 0], sizes = [1, 8, 256], strides = [1, 1, 1]} : vector<8x8x256xf32> to vector<1x8x256xf32>
    %292 = vector.shape_cast %291 : vector<1x8x256xf32> to vector<8x256xf32>
    %293 = vector.extract_strided_slice %254 {offsets = [2, 0, 0], sizes = [1, 8, 256], strides = [1, 1, 1]} : vector<8x8x256xf32> to vector<1x8x256xf32>
    %294 = vector.shape_cast %293 : vector<1x8x256xf32> to vector<8x256xf32>
    %295 = vector.shape_cast %26 : vector<1x256xi1> to vector<1x256xi1>
    %296 = vector.broadcast %295 : vector<1x256xi1> to vector<8x256xi1>
    %297 = arith.select %296, %292, %294 : vector<8x256xi1>, vector<8x256xf32>
    %298 = vector.extract_strided_slice %254 {offsets = [6, 0, 0], sizes = [1, 8, 256], strides = [1, 1, 1]} : vector<8x8x256xf32> to vector<1x8x256xf32>
    %299 = vector.shape_cast %298 : vector<1x8x256xf32> to vector<8x256xf32>
    %300 = vector.extract_strided_slice %254 {offsets = [1, 0, 0], sizes = [1, 8, 256], strides = [1, 1, 1]} : vector<8x8x256xf32> to vector<1x8x256xf32>
    %301 = vector.shape_cast %300 : vector<1x8x256xf32> to vector<8x256xf32>
    %302 = vector.shape_cast %26 : vector<1x256xi1> to vector<1x256xi1>
    %303 = vector.broadcast %302 : vector<1x256xi1> to vector<8x256xi1>
    %304 = arith.select %303, %299, %301 : vector<8x256xi1>, vector<8x256xf32>
    %305 = vector.extract_strided_slice %254 {offsets = [7, 0, 0], sizes = [1, 8, 256], strides = [1, 1, 1]} : vector<8x8x256xf32> to vector<1x8x256xf32>
    %306 = vector.shape_cast %305 : vector<1x8x256xf32> to vector<8x256xf32>
    %307 = vector.extract_strided_slice %254 {offsets = [0, 0, 0], sizes = [1, 8, 256], strides = [1, 1, 1]} : vector<8x8x256xf32> to vector<1x8x256xf32>
    %308 = vector.shape_cast %307 : vector<1x8x256xf32> to vector<8x256xf32>
    %309 = vector.shape_cast %26 : vector<1x256xi1> to vector<1x256xi1>
    %310 = vector.broadcast %309 : vector<1x256xi1> to vector<8x256xi1>
    %311 = arith.select %310, %306, %308 : vector<8x256xi1>, vector<8x256xf32>
    %cst_30 = arith.constant 0.000000e+00 : f32
    %312 = vector.broadcast %cst_30 : f32 to vector<8x64xf32>
    %cst_31 = arith.constant 0.000000e+00 : f32
    %313 = vector.broadcast %cst_31 : f32 to vector<8x64xf32>
    %cst_32 = arith.constant dense<0.000000e+00> : vector<8x256xf32>
    %314 = tpu.matmul %312, %255, %cst_32 {dimension_numbers = #tpu.dot_dimension_numbers<[1], [0], [0], [1], [0, 0, 1, 1], [], []>} : vector<8x64xf32>, vector<64x256xf32>, vector<8x256xf32> -> vector<8x256xf32>
    %315 = arith.addf %262, %314 : vector<8x256xf32>
    %316 = math.tanh %315 : vector<8x256xf32>
    %317 = vector.broadcast %5 : vector<1x256xf32> to vector<8x256xf32>
    %318 = arith.mulf %316, %317 : vector<8x256xf32>
    %319 = vector.broadcast %8 : vector<1x256xf32> to vector<8x256xf32>
    %320 = arith.addf %318, %319 : vector<8x256xf32>
    %321 = vector.extract_strided_slice %320 {offsets = [0, 0], sizes = [8, 64], strides = [1, 1]} : vector<8x256xf32> to vector<8x64xf32>
    %322 = vector.extract_strided_slice %320 {offsets = [0, 64], sizes = [8, 64], strides = [1, 1]} : vector<8x256xf32> to vector<8x64xf32>
    %323 = vector.extract_strided_slice %320 {offsets = [0, 128], sizes = [8, 64], strides = [1, 1]} : vector<8x256xf32> to vector<8x64xf32>
    %324 = vector.extract_strided_slice %320 {offsets = [0, 192], sizes = [8, 64], strides = [1, 1]} : vector<8x256xf32> to vector<8x64xf32>
    %325 = arith.mulf %322, %313 : vector<8x64xf32>
    %326 = arith.mulf %321, %324 : vector<8x64xf32>
    %327 = arith.addf %325, %326 : vector<8x64xf32>
    %328 = math.tanh %327 : vector<8x64xf32>
    %329 = arith.mulf %323, %328 : vector<8x64xf32>
    %cst_33 = arith.constant dense<0.000000e+00> : vector<8x256xf32>
    %330 = tpu.matmul %329, %255, %cst_33 {dimension_numbers = #tpu.dot_dimension_numbers<[1], [0], [0], [1], [0, 0, 1, 1], [], []>} : vector<8x64xf32>, vector<64x256xf32>, vector<8x256xf32> -> vector<8x256xf32>
    %331 = arith.addf %269, %330 : vector<8x256xf32>
    %332 = math.tanh %331 : vector<8x256xf32>
    %333 = vector.broadcast %5 : vector<1x256xf32> to vector<8x256xf32>
    %334 = arith.mulf %332, %333 : vector<8x256xf32>
    %335 = vector.broadcast %8 : vector<1x256xf32> to vector<8x256xf32>
    %336 = arith.addf %334, %335 : vector<8x256xf32>
    %337 = vector.extract_strided_slice %336 {offsets = [0, 0], sizes = [8, 64], strides = [1, 1]} : vector<8x256xf32> to vector<8x64xf32>
    %338 = vector.extract_strided_slice %336 {offsets = [0, 64], sizes = [8, 64], strides = [1, 1]} : vector<8x256xf32> to vector<8x64xf32>
    %339 = vector.extract_strided_slice %336 {offsets = [0, 128], sizes = [8, 64], strides = [1, 1]} : vector<8x256xf32> to vector<8x64xf32>
    %340 = vector.extract_strided_slice %336 {offsets = [0, 192], sizes = [8, 64], strides = [1, 1]} : vector<8x256xf32> to vector<8x64xf32>
    %341 = arith.mulf %338, %327 : vector<8x64xf32>
    %342 = arith.mulf %337, %340 : vector<8x64xf32>
    %343 = arith.addf %341, %342 : vector<8x64xf32>
    %344 = math.tanh %343 : vector<8x64xf32>
    %345 = arith.mulf %339, %344 : vector<8x64xf32>
    %cst_34 = arith.constant dense<0.000000e+00> : vector<8x256xf32>
    %346 = tpu.matmul %345, %255, %cst_34 {dimension_numbers = #tpu.dot_dimension_numbers<[1], [0], [0], [1], [0, 0, 1, 1], [], []>} : vector<8x64xf32>, vector<64x256xf32>, vector<8x256xf32> -> vector<8x256xf32>
    %347 = arith.addf %276, %346 : vector<8x256xf32>
    %348 = math.tanh %347 : vector<8x256xf32>
    %349 = vector.broadcast %5 : vector<1x256xf32> to vector<8x256xf32>
    %350 = arith.mulf %348, %349 : vector<8x256xf32>
    %351 = vector.broadcast %8 : vector<1x256xf32> to vector<8x256xf32>
    %352 = arith.addf %350, %351 : vector<8x256xf32>
    %353 = vector.extract_strided_slice %352 {offsets = [0, 0], sizes = [8, 64], strides = [1, 1]} : vector<8x256xf32> to vector<8x64xf32>
    %354 = vector.extract_strided_slice %352 {offsets = [0, 64], sizes = [8, 64], strides = [1, 1]} : vector<8x256xf32> to vector<8x64xf32>
    %355 = vector.extract_strided_slice %352 {offsets = [0, 128], sizes = [8, 64], strides = [1, 1]} : vector<8x256xf32> to vector<8x64xf32>
    %356 = vector.extract_strided_slice %352 {offsets = [0, 192], sizes = [8, 64], strides = [1, 1]} : vector<8x256xf32> to vector<8x64xf32>
    %357 = arith.mulf %354, %343 : vector<8x64xf32>
    %358 = arith.mulf %353, %356 : vector<8x64xf32>
    %359 = arith.addf %357, %358 : vector<8x64xf32>
    %360 = math.tanh %359 : vector<8x64xf32>
    %361 = arith.mulf %355, %360 : vector<8x64xf32>
    %cst_35 = arith.constant dense<0.000000e+00> : vector<8x256xf32>
    %362 = tpu.matmul %361, %255, %cst_35 {dimension_numbers = #tpu.dot_dimension_numbers<[1], [0], [0], [1], [0, 0, 1, 1], [], []>} : vector<8x64xf32>, vector<64x256xf32>, vector<8x256xf32> -> vector<8x256xf32>
    %363 = arith.addf %283, %362 : vector<8x256xf32>
    %364 = math.tanh %363 : vector<8x256xf32>
    %365 = vector.broadcast %5 : vector<1x256xf32> to vector<8x256xf32>
    %366 = arith.mulf %364, %365 : vector<8x256xf32>
    %367 = vector.broadcast %8 : vector<1x256xf32> to vector<8x256xf32>
    %368 = arith.addf %366, %367 : vector<8x256xf32>
    %369 = vector.extract_strided_slice %368 {offsets = [0, 0], sizes = [8, 64], strides = [1, 1]} : vector<8x256xf32> to vector<8x64xf32>
    %370 = vector.extract_strided_slice %368 {offsets = [0, 64], sizes = [8, 64], strides = [1, 1]} : vector<8x256xf32> to vector<8x64xf32>
    %371 = vector.extract_strided_slice %368 {offsets = [0, 128], sizes = [8, 64], strides = [1, 1]} : vector<8x256xf32> to vector<8x64xf32>
    %372 = vector.extract_strided_slice %368 {offsets = [0, 192], sizes = [8, 64], strides = [1, 1]} : vector<8x256xf32> to vector<8x64xf32>
    %373 = arith.mulf %370, %359 : vector<8x64xf32>
    %374 = arith.mulf %369, %372 : vector<8x64xf32>
    %375 = arith.addf %373, %374 : vector<8x64xf32>
    %376 = math.tanh %375 : vector<8x64xf32>
    %377 = arith.mulf %371, %376 : vector<8x64xf32>
    %cst_36 = arith.constant dense<0.000000e+00> : vector<8x256xf32>
    %378 = tpu.matmul %377, %255, %cst_36 {dimension_numbers = #tpu.dot_dimension_numbers<[1], [0], [0], [1], [0, 0, 1, 1], [], []>} : vector<8x64xf32>, vector<64x256xf32>, vector<8x256xf32> -> vector<8x256xf32>
    %379 = arith.addf %290, %378 : vector<8x256xf32>
    %380 = math.tanh %379 : vector<8x256xf32>
    %381 = vector.broadcast %5 : vector<1x256xf32> to vector<8x256xf32>
    %382 = arith.mulf %380, %381 : vector<8x256xf32>
    %383 = vector.broadcast %8 : vector<1x256xf32> to vector<8x256xf32>
    %384 = arith.addf %382, %383 : vector<8x256xf32>
    %385 = vector.extract_strided_slice %384 {offsets = [0, 0], sizes = [8, 64], strides = [1, 1]} : vector<8x256xf32> to vector<8x64xf32>
    %386 = vector.extract_strided_slice %384 {offsets = [0, 64], sizes = [8, 64], strides = [1, 1]} : vector<8x256xf32> to vector<8x64xf32>
    %387 = vector.extract_strided_slice %384 {offsets = [0, 128], sizes = [8, 64], strides = [1, 1]} : vector<8x256xf32> to vector<8x64xf32>
    %388 = vector.extract_strided_slice %384 {offsets = [0, 192], sizes = [8, 64], strides = [1, 1]} : vector<8x256xf32> to vector<8x64xf32>
    %389 = arith.mulf %386, %375 : vector<8x64xf32>
    %390 = arith.mulf %385, %388 : vector<8x64xf32>
    %391 = arith.addf %389, %390 : vector<8x64xf32>
    %392 = math.tanh %391 : vector<8x64xf32>
    %393 = arith.mulf %387, %392 : vector<8x64xf32>
    %cst_37 = arith.constant dense<0.000000e+00> : vector<8x256xf32>
    %394 = tpu.matmul %393, %255, %cst_37 {dimension_numbers = #tpu.dot_dimension_numbers<[1], [0], [0], [1], [0, 0, 1, 1], [], []>} : vector<8x64xf32>, vector<64x256xf32>, vector<8x256xf32> -> vector<8x256xf32>
    %395 = arith.addf %297, %394 : vector<8x256xf32>
    %396 = math.tanh %395 : vector<8x256xf32>
    %397 = vector.broadcast %5 : vector<1x256xf32> to vector<8x256xf32>
    %398 = arith.mulf %396, %397 : vector<8x256xf32>
    %399 = vector.broadcast %8 : vector<1x256xf32> to vector<8x256xf32>
    %400 = arith.addf %398, %399 : vector<8x256xf32>
    %401 = vector.extract_strided_slice %400 {offsets = [0, 0], sizes = [8, 64], strides = [1, 1]} : vector<8x256xf32> to vector<8x64xf32>
    %402 = vector.extract_strided_slice %400 {offsets = [0, 64], sizes = [8, 64], strides = [1, 1]} : vector<8x256xf32> to vector<8x64xf32>
    %403 = vector.extract_strided_slice %400 {offsets = [0, 128], sizes = [8, 64], strides = [1, 1]} : vector<8x256xf32> to vector<8x64xf32>
    %404 = vector.extract_strided_slice %400 {offsets = [0, 192], sizes = [8, 64], strides = [1, 1]} : vector<8x256xf32> to vector<8x64xf32>
    %405 = arith.mulf %402, %391 : vector<8x64xf32>
    %406 = arith.mulf %401, %404 : vector<8x64xf32>
    %407 = arith.addf %405, %406 : vector<8x64xf32>
    %408 = math.tanh %407 : vector<8x64xf32>
    %409 = arith.mulf %403, %408 : vector<8x64xf32>
    %cst_38 = arith.constant dense<0.000000e+00> : vector<8x256xf32>
    %410 = tpu.matmul %409, %255, %cst_38 {dimension_numbers = #tpu.dot_dimension_numbers<[1], [0], [0], [1], [0, 0, 1, 1], [], []>} : vector<8x64xf32>, vector<64x256xf32>, vector<8x256xf32> -> vector<8x256xf32>
    %411 = arith.addf %304, %410 : vector<8x256xf32>
    %412 = math.tanh %411 : vector<8x256xf32>
    %413 = vector.broadcast %5 : vector<1x256xf32> to vector<8x256xf32>
    %414 = arith.mulf %412, %413 : vector<8x256xf32>
    %415 = vector.broadcast %8 : vector<1x256xf32> to vector<8x256xf32>
    %416 = arith.addf %414, %415 : vector<8x256xf32>
    %417 = vector.extract_strided_slice %416 {offsets = [0, 0], sizes = [8, 64], strides = [1, 1]} : vector<8x256xf32> to vector<8x64xf32>
    %418 = vector.extract_strided_slice %416 {offsets = [0, 64], sizes = [8, 64], strides = [1, 1]} : vector<8x256xf32> to vector<8x64xf32>
    %419 = vector.extract_strided_slice %416 {offsets = [0, 128], sizes = [8, 64], strides = [1, 1]} : vector<8x256xf32> to vector<8x64xf32>
    %420 = vector.extract_strided_slice %416 {offsets = [0, 192], sizes = [8, 64], strides = [1, 1]} : vector<8x256xf32> to vector<8x64xf32>
    %421 = arith.mulf %418, %407 : vector<8x64xf32>
    %422 = arith.mulf %417, %420 : vector<8x64xf32>
    %423 = arith.addf %421, %422 : vector<8x64xf32>
    %424 = math.tanh %423 : vector<8x64xf32>
    %425 = arith.mulf %419, %424 : vector<8x64xf32>
    %cst_39 = arith.constant dense<0.000000e+00> : vector<8x256xf32>
    %426 = tpu.matmul %425, %255, %cst_39 {dimension_numbers = #tpu.dot_dimension_numbers<[1], [0], [0], [1], [0, 0, 1, 1], [], []>} : vector<8x64xf32>, vector<64x256xf32>, vector<8x256xf32> -> vector<8x256xf32>
    %427 = arith.addf %311, %426 : vector<8x256xf32>
    %428 = math.tanh %427 : vector<8x256xf32>
    %429 = vector.broadcast %5 : vector<1x256xf32> to vector<8x256xf32>
    %430 = arith.mulf %428, %429 : vector<8x256xf32>
    %431 = vector.broadcast %8 : vector<1x256xf32> to vector<8x256xf32>
    %432 = arith.addf %430, %431 : vector<8x256xf32>
    %433 = vector.extract_strided_slice %432 {offsets = [0, 0], sizes = [8, 64], strides = [1, 1]} : vector<8x256xf32> to vector<8x64xf32>
    %434 = vector.extract_strided_slice %432 {offsets = [0, 64], sizes = [8, 64], strides = [1, 1]} : vector<8x256xf32> to vector<8x64xf32>
    %435 = vector.extract_strided_slice %432 {offsets = [0, 128], sizes = [8, 64], strides = [1, 1]} : vector<8x256xf32> to vector<8x64xf32>
    %436 = vector.extract_strided_slice %432 {offsets = [0, 192], sizes = [8, 64], strides = [1, 1]} : vector<8x256xf32> to vector<8x64xf32>
    %437 = arith.mulf %434, %423 : vector<8x64xf32>
    %438 = arith.mulf %433, %436 : vector<8x64xf32>
    %439 = arith.addf %437, %438 : vector<8x64xf32>
    %440 = math.tanh %439 : vector<8x64xf32>
    %441 = arith.mulf %435, %440 : vector<8x64xf32>
    %442 = vector.shape_cast %29 : vector<1x64xi1> to vector<1x64xi1>
    %443 = vector.broadcast %442 : vector<1x64xi1> to vector<8x64xi1>
    %444 = arith.select %443, %441, %329 : vector<8x64xi1>, vector<8x64xf32>
    %c0_40 = arith.constant 0 : index
    %c0_41 = arith.constant 0 : index
    %445 = vector.load %arg6[%c0_40, %c0_41] : memref<64x64xf32, #tpu.memory_space<vmem>>, vector<64x64xf32>
    %cst_42 = arith.constant dense<0.000000e+00> : vector<8x64xf32>
    %446 = tpu.matmul %444, %445, %cst_42 {dimension_numbers = #tpu.dot_dimension_numbers<[1], [0], [0], [1], [0, 0, 1, 1], [], []>} : vector<8x64xf32>, vector<64x64xf32>, vector<8x64xf32> -> vector<8x64xf32>
    %c0_43 = arith.constant 0 : index
    %c0_44 = arith.constant 0 : index
    %447 = vector.load %arg7[%c0_43, %c0_44] : memref<1x64xf32, #tpu.memory_space<vmem>>, vector<1x64xf32>
    %448 = vector.broadcast %447 : vector<1x64xf32> to vector<8x64xf32>
    %449 = arith.addf %446, %448 : vector<8x64xf32>
    %cst_45 = arith.constant 0.000000e+00 : f32
    %450 = vector.broadcast %cst_45 : f32 to vector<8x64xf32>
    %451 = arith.maximumf %449, %450 : vector<8x64xf32>
    %c0_46 = arith.constant 0 : index
    %c0_47 = arith.constant 0 : index
    %452 = vector.load %arg8[%c0_46, %c0_47] : memref<64x1xf32, #tpu.memory_space<vmem>>, vector<64x1xf32>
    %cst_48 = arith.constant dense<0.000000e+00> : vector<8x1xf32>
    %453 = tpu.matmul %451, %452, %cst_48 {dimension_numbers = #tpu.dot_dimension_numbers<[1], [0], [0], [1], [0, 0, 1, 1], [], []>} : vector<8x64xf32>, vector<64x1xf32>, vector<8x1xf32> -> vector<8x1xf32>
    %c0_49 = arith.constant 0 : index
    %c0_50 = arith.constant 0 : index
    %454 = vector.load %arg9[%c0_49, %c0_50] : memref<1x1xf32, #tpu.memory_space<vmem>>, vector<1x1xf32>
    %455 = vector.broadcast %454 : vector<1x1xf32> to vector<8x1xf32>
    %456 = arith.addf %453, %455 : vector<8x1xf32>
    %cst_51 = arith.constant 5.000000e-01 : f32
    %457 = vector.broadcast %cst_51 : f32 to vector<8x1xf32>
    %458 = arith.mulf %457, %456 : vector<8x1xf32>
    %459 = math.tanh %458 : vector<8x1xf32>
    %cst_52 = arith.constant 1.000000e+00 : f32
    %460 = vector.broadcast %cst_52 : f32 to vector<8x1xf32>
    %461 = arith.addf %459, %460 : vector<8x1xf32>
    %cst_53 = arith.constant 5.000000e-01 : f32
    %462 = vector.broadcast %cst_53 : f32 to vector<8x1xf32>
    %463 = arith.mulf %462, %461 : vector<8x1xf32>
    %c0_54 = arith.constant 0 : index
    %c0_55 = arith.constant 0 : index
    %464 = vector.load %arg10[%c0_54, %c0_55] : memref<8x1xf32, #tpu.memory_space<vmem>>, vector<8x1xf32>
    tpu.vector_store %arg10[%c0_54, %c0_55], %463 {strides = array<i32>} : memref<8x1xf32, #tpu.memory_space<vmem>>, vector<8x1xf32>,
    return
  }
}

</mosaic_0001>

<bundles_post_ra>
// kernel: lstm_ann_forward.1
= control target key start
LH: loop header
LB: loop body
LE: loop exit
PB: predicated region body
PF: predicated region fallthrough
CT: control target
= control target key end

     0   :  { %s3897_s0 = inlined_call_operand.vmem [shape: s32[64,1], index: 0, kind: input, shape index: {}]   ;;  %s3898_s1 = inlined_call_operand.hbm [shape: f32[128,256], index: 1, kind: input, shape index: {}]   ;;  %s3899_s2 = inlined_call_operand.vmem [shape: f32[64,256], index: 2, kind: input, shape index: {}]   ;;  %s3900_s3 = inlined_call_operand.hbm [shape: f32[64,256], index: 3, kind: input, shape index: {}]   ;;  %s3901_s4 = inlined_call_operand.hbm [shape: f32[64,256], index: 4, kind: input, shape index: {}]   ;;  %s3902_s5 = inlined_call_operand.vmem [shape: f32[1,256], index: 5, kind: input, shape index: {}]   ;;  %s3903_s6 = inlined_call_operand.vmem [shape: f32[64,64], index: 6, kind: input, shape index: {}]   ;;  %s3904_s7 = inlined_call_operand.vmem [shape: f32[1,64], index: 7, kind: input, shape index: {}]   ;;  %s3905_s8 = inlined_call_operand.vmem [shape: f32[64,1], index: 8, kind: input, shape index: {}]   ;;  %s3906_s9 = inlined_call_operand.<no memory space> [shape: f32[1,1], index: 9, kind: input, shape index: {}]   ;;  %s3907_s10 = inlined_call_operand.vmem [shape: f32[8,1], index: 10, kind: output, shape index: {}]  }
   0x1   :  { %v15_v0 = vstv %s3906_s9 }
   0x2   :  { %16 = vst [vmem:[#allocation2] sm:$0x1] %v15_v0 }
   0x3   :  { %17 = vsyncpa [#allocation4], 0 }
   0x4   :  { %18 = vsyncpa [#allocation6], 0  ;;  %s2937_s15 = smov [#allocation5]   ;;  %s2938_s17 = smov [#allocation3]  }
   0x5   :  { %s40_s16 = sshll.u32 %s2937_s15, 4  ;;  %s26_s18 = sshll.u32 %s2938_s17, 4  ;;  %s41_s16 = int_to_ptr.vmem [resolvable:$true] %s40_s16  ;;  %s3006_s18 = int_to_ptr.vmem [resolvable:$true] %s26_s18 }
   0x6   :  { %s2867_s21 = scalar_lea.hbm %s3900_s3, 2048 }
   0x7   :  { %p2868_p0 = scmp.ne.s32.totalorder %s3900_s3, %s2867_s21  ;;  %p2871_p1 = scmp.lt.u32.totalorder %s2867_s21, %s3900_s3 }
   0x9   :  { %p2873_p2 = pnand %p2871_p1, %p2868_p0 }
   0xb   :  { %2876 = shalt.err (!%p2873_p2)
}
   0xc   :  { %s2877_s25 = scalar_lea.vmem %s41_s16, 2048  ;;  %p2882_p4 = scmp.lt.s32.totalorder %s41_s16, %s41_s16 }
   0xd   :  { %p2878_p3 = scmp.ne.s32.totalorder %s41_s16, %s2877_s25  ;;  %p2883_p5 = scmp.lt.s32.totalorder %s2877_s25, %s2877_s25 }
   0xf   :  { %p2884_p6 = por %p2883_p5, %p2882_p4 }
  0x11   :  { %p2885_p7 = pnand %p2884_p6, %p2878_p3 }
  0x13   :  { %2888 = shalt.err (!%p2885_p7)
}
  0x14   :  { %s2939_s26 = smov 256   ;;  %s2940_s27 = smov 16  }
  0x15   :  { %46 = dma.hbm_to_vmem [thread:$0]  %s3900_s3, 2048, %s41_s16, [#allocation6], %s2939_s26, %s2939_s26, %s2940_s27  }
  0x16   :  { %s2889_s12 = scalar_lea.hbm %s3898_s1, 4096 }
  0x17   :  { %p2890_p8 = scmp.ne.s32.totalorder %s3898_s1, %s2889_s12  ;;  %p2893_p9 = scmp.lt.u32.totalorder %s2889_s12, %s3898_s1 }
  0x19   :  { %p2895_p10 = pnand %p2893_p9, %p2890_p8 }
  0x1b   :  { %2898 = shalt.err (!%p2895_p10)
}
  0x1c   :  { %s2899_s19 = scalar_lea.vmem %s3006_s18, 4096  ;;  %p2904_p12 = scmp.lt.s32.totalorder %s3006_s18, %s3006_s18 }
  0x1d   :  { %p2900_p11 = scmp.ne.s32.totalorder %s3006_s18, %s2899_s19  ;;  %p2905_p13 = scmp.lt.s32.totalorder %s2899_s19, %s2899_s19 }
  0x1f   :  { %p2906_p0 = por %p2905_p13, %p2904_p12 }
  0x21   :  { %p2907_p1 = pnand %p2906_p0, %p2900_p11 }
  0x23   :  { %2910 = shalt.err (!%p2907_p1)
}
  0x24   :  { %32 = dma.hbm_to_vmem [thread:$0]  %s3898_s1, 4096, %s3006_s18, [#allocation4], %s2939_s26, %s2939_s26, %s2940_s27  }
  0x25   :  { %s2941_s20 = smov [#allocation7]   ;;  %s2911_s24 = scalar_lea.hbm %s3901_s4, 2048 }
  0x26   :  { %s52_s21 = sshll.u32 %s2941_s20, 4  ;;  %p2912_p2 = scmp.ne.s32.totalorder %s3901_s4, %s2911_s24  ;;  %s53_s21 = int_to_ptr.vmem [resolvable:$true] %s52_s21 }
  0x27   :  { %p2915_p3 = scmp.lt.u32.totalorder %s2911_s24, %s3901_s4 }
  0x29   :  { %p2917_p4 = pnand %p2915_p3, %p2912_p2 }
  0x2b   :  { %2920 = shalt.err (!%p2917_p4)
}
  0x2c   :  { %s2921_s30 = scalar_lea.vmem %s53_s21, 2048  ;;  %p2926_p6 = scmp.lt.s32.totalorder %s53_s21, %s53_s21 }
  0x2d   :  { %p2922_p5 = scmp.ne.s32.totalorder %s53_s21, %s2921_s30  ;;  %p2927_p7 = scmp.lt.s32.totalorder %s2921_s30, %s2921_s30 }
  0x2f   :  { %p2928_p8 = por %p2927_p7, %p2926_p6 }
  0x31   :  { %p2929_p9 = pnand %p2928_p8, %p2922_p5 }
  0x33   :  { %2932 = shalt.err (!%p2929_p9)
}
  0x34   :  { %58 = dma.hbm_to_vmem [thread:$0]  %s3901_s4, 2048, %s53_s21, [#allocation6], %s2939_s26, %s2939_s26, %s2940_s27  }
  0x35   :  { %2933 = dma.done.wait [#allocation4], 4096  }
  0x36   :  { %2934 = vsyncadd [#allocation4], 4294963200 }
  0x37   :  { %2935 = dma.done.wait [#allocation6], 4096  }
  0x38   :  { %2936 = vsyncadd [#allocation6], 4294963200  ;;  %v2942_v1 = vmov 0   ;;  %v148_v2 = vld [vmem:[%s3897_s0 + $0x10] sm:$0xff]  ;;  %v146_v3 = vld [vmem:[%s3897_s0] sm:$0xff]  ;;  %v2943_v7 = vmov 0.0  }
  0x39   :  { %2768 = vset.pattern.permute.xlu1 %v2942_v1  ;;  %2767 = vset.pattern.permute.xlu0 %v2942_v1  ;;  %v149_v4 = vld [vmem:[%s3897_s0 + $0x18] sm:$0xff]  ;;  %v147_v5 = vld [vmem:[%s3897_s0 + $0x8] sm:$0xff]  ;;  %v150_v21 = vld [vmem:[%s3897_s0 + $0x20] sm:$0xff]  ;;  %vm351_vm11 = vcmask 523264   ;;  %vm2947_vm13 = vmmov 0   ;;  %vm2322_vm14 = vcmask 7168  }
  0x3a   :  { %161 = vperm.xlu1 %2768, %v148_v2   ;;  %155 = vperm.xlu0 %2767, %v146_v3   ;;  %v115_v6 = vld [vmem:[#allocation3 + $0x8] sm:$0xff]  ;;  %v117_v8 = vld [vmem:[#allocation3 + $0x18] sm:$0xff]  ;;  %v114_v9 = vld [vmem:[#allocation3] sm:$0xff] }
  0x3b   :  { %266 = vmatprep.mubr.f32.mxu0 %v2943_v7  ;;  %419 = vmatprep.mubr.f32.mxu1 %v2943_v7  ;;  %v116_v10 = vld [vmem:[#allocation3 + $0x10] sm:$0xff]  ;;  %v2428_v11 = vpack.c.bf16 %v117_v8, %v115_v6  ;;  %v119_v13 = vld [vmem:[#allocation3 + $0x28] sm:$0xff]  ;;  %v121_v14 = vld [vmem:[#allocation3 + $0x38] sm:$0xff] }
  0x3c   :  { %v2430_v12 = vpack.c.bf16 %v116_v10, %v114_v9  ;;  %v118_v15 = vld [vmem:[#allocation3 + $0x20] sm:$0xff]  ;;  %v2432_v16 = vpack.c.bf16 %v121_v14, %v119_v13  ;;  %v120_v17 = vld [vmem:[#allocation3 + $0x30] sm:$0xff]  ;;  %v123_v18 = vld [vmem:[#allocation3 + $0x48] sm:$0xff] }
  0x3d   :  { %v125_v19 = vld [vmem:[#allocation3 + $0x58] sm:$0xff]  ;;  %v151_v20 = vld [vmem:[%s3897_s0 + $0x28] sm:$0xff]  ;;  %2429 = vmatprep.subr.bf16.mxu0 %v2428_v11  ;;  %v2434_v22 = vpack.c.bf16 %v120_v17, %v118_v15  ;;  %v124_v25 = vld [vmem:[#allocation3 + $0x50] sm:$0xff] }
  0x3e   :  { %164 = vperm.xlu1 %2768, %v149_v4   ;;  %158 = vperm.xlu0 %2767, %v147_v5   ;;  %v2436_v23 = vpack.c.bf16 %v125_v19, %v123_v18  ;;  %v122_v24 = vld [vmem:[#allocation3 + $0x40] sm:$0xff]  ;;  %v127_v26 = vld [vmem:[#allocation3 + $0x68] sm:$0xff]  ;;  %v129_v27 = vld [vmem:[#allocation3 + $0x78] sm:$0xff] }
  0x3f   :  { %2431 = vmatpush1.bf16.msra.mxu0 %v2430_v12  ;;  %v153_v28 = vld [vmem:[%s3897_s0 + $0x38] sm:$0xff]  ;;  %v152_v29 = vld [vmem:[%s3897_s0 + $0x30] sm:$0xff]  ;;  %v2438_v30 = vpack.c.bf16 %v124_v25, %v122_v24  ;;  %v2440_v31 = vpack.c.bf16 %v129_v27, %v127_v26  ;;  %v126_v32 = vld [vmem:[#allocation3 + $0x60] sm:$0xff] }
  0x40   :  { %2433 = vmatprep.subr.bf16.mxu0 %v2432_v16  ;;  %v128_v33 = vld [vmem:[#allocation3 + $0x70] sm:$0xff]  ;;  %v131_v34 = vld [vmem:[#allocation3 + $0x88] sm:$0xff]  ;;  %v133_v35 = vld [vmem:[#allocation3 + $0x98] sm:$0xff] }
  0x41   :  { %v316_v36 = vld [vmem:[%s3899_s2 + $0x8] sm:$0xff]  ;;  %v318_v37 = vld [vmem:[%s3899_s2 + $0x18] sm:$0xff]  ;;  %v315_v39 = vld [vmem:[%s3899_s2] sm:$0xff]  ;;  %v2442_v41 = vpack.c.bf16 %v128_v33, %v126_v32  ;;  %v2444_v46 = vpack.c.bf16 %v133_v35, %v131_v34 }
  0x42   :  { %170 = vperm.xlu1 %2768, %v151_v20   ;;  %167 = vperm.xlu0 %2767, %v150_v21   ;;  %v3090_v38 = vpack.c.bf16 %v318_v37, %v316_v36  ;;  %v317_v40 = vld [vmem:[%s3899_s2 + $0x10] sm:$0xff]  ;;  %v130_v42 = vld [vmem:[#allocation3 + $0x80] sm:$0xff]  ;;  %v322_v45 = vld [vmem:[%s3899_s2 + $0x38] sm:$0xff]  ;;  %v78_v20 = vlaneseq }
  0x43   :  { %2435 = vmatpush1.bf16.msra.mxu0 %v2434_v22  ;;  %v3098_v43 = vpack.c.bf16 %v317_v40, %v315_v39  ;;  %v320_v44 = vld [vmem:[%s3899_s2 + $0x28] sm:$0xff]  ;;  %v132_v47 = vld [vmem:[#allocation3 + $0x90] sm:$0xff]  ;;  %v319_v49 = vld [vmem:[%s3899_s2 + $0x20] sm:$0xff] }
  0x44   :  { %2437 = vmatprep.subr.bf16.mxu0 %v2436_v23  ;;  %2461 = vmatprep.subr.bf16.mxu1 %v3090_v38  ;;  %v3107_v48 = vpack.c.bf16 %v322_v45, %v320_v44  ;;  %v321_v50 = vld [vmem:[%s3899_s2 + $0x30] sm:$0xff]  ;;  %v137_v52 = vld [vmem:[#allocation3 + $0xb8] sm:$0xff]  ;;  %v2446_v54 = vpack.c.bf16 %v132_v47, %v130_v42  ;;  %v134_v55 = vld [vmem:[#allocation3 + $0xa0] sm:$0xff]  ;;  %v3169_v21 = vand.u32 127, %v78_v20  ;;  %v2944_v23 = vmov 1.0  }
  0x45   :  { %v135_v51 = vld [vmem:[#allocation3 + $0xa8] sm:$0xff]  ;;  %2463 = vmatpush1.bf16.msra.mxu1 %v3098_v43  ;;  %v3116_v53 = vpack.c.bf16 %v321_v50, %v319_v49  ;;  %v326_v57 = vld [vmem:[%s3899_s2 + $0x58] sm:$0xff]  ;;  %v323_v61 = vld [vmem:[%s3899_s2 + $0x40] sm:$0xff] }
  0x46   :  { %176 = vperm.xlu1 %2768, %v153_v28   ;;  %173 = vperm.xlu0 %2767, %v152_v29   ;;  %v324_v56 = vld [vmem:[%s3899_s2 + $0x48] sm:$0xff]  ;;  %v2448_v58 = vpack.c.bf16 %v137_v52, %v135_v51  ;;  %v136_v59 = vld [vmem:[#allocation3 + $0xb0] sm:$0xff]  ;;  %v141_v0 = vld [vmem:[#allocation3 + $0xd8] sm:$0xff]  ;;  %v80_v37 = vadd.s32 128, %v3169_v21  ;;  %vm113_vm12 = vcmp.lt.s32.totalorder %v3169_v21, 32 }
  0x47   :  { %2439 = vmatpush1.bf16.msra.mxu0 %v2438_v30  ;;  %2465 = vmatprep.subr.bf16.mxu1 %v3107_v48  ;;  %v3125_v60 = vpack.c.bf16 %v326_v57, %v324_v56  ;;  %v325_v62 = vld [vmem:[%s3899_s2 + $0x50] sm:$0xff]  ;;  %v2450_v2 = vpack.c.bf16 %v136_v59, %v134_v55  ;;  %v138_v3 = vld [vmem:[#allocation3 + $0xc0] sm:$0xff]  ;;  %v330_v5 = vld [vmem:[%s3899_s2 + $0x78] sm:$0xff] }
  0x48   :  { %2441 = vmatprep.subr.bf16.mxu0 %v2440_v31  ;;  %v139_v63 = vld [vmem:[#allocation3 + $0xc8] sm:$0xff]  ;;  %v3134_v1 = vpack.c.bf16 %v325_v62, %v323_v61  ;;  %v140_v8 = vld [vmem:[#allocation3 + $0xd0] sm:$0xff]  ;;  %v327_v10 = vld [vmem:[%s3899_s2 + $0x60] sm:$0xff]  ;;  %v98_v42 = vand.u32 63, %v80_v37  ;;  %vm82_vm10 = vcmp.lt.s32.totalorder %v80_v37, 192 }
  0x49   :  { %2467 = vmatpush1.bf16.msra.mxu1 %v3116_v53  ;;  %v328_v4 = vld [vmem:[%s3899_s2 + $0x68] sm:$0xff]  ;;  %v2452_v6 = vpack.c.bf16 %v141_v0, %v139_v63  ;;  %v329_v11 = vld [vmem:[%s3899_s2 + $0x70] sm:$0xff]  ;;  %v145_v13 = vld [vmem:[#allocation3 + $0xf8] sm:$0xff]  ;;  %v2454_v15 = vpack.c.bf16 %v140_v8, %v138_v3  ;;  %s2945_s2 = smov 64  }
  0x4a   :  { %2469 = vmatprep.subr.bf16.mxu1 %v3125_v60  ;;  %v3143_v9 = vpack.c.bf16 %v330_v5, %v328_v4  ;;  %v143_v12 = vld [vmem:[#allocation3 + $0xe8] sm:$0xff]  ;;  %v3152_v14 = vpack.c.bf16 %v329_v11, %v327_v10  ;;  %v142_v17 = vld [vmem:[#allocation3 + $0xe0] sm:$0xff]  ;;  %v144_v18 = vld [vmem:[#allocation3 + $0xf0] sm:$0xff]  ;;  %vm3225_vm9 = vcmp.lt.s32.totalorder %v98_v42, 32 }
  0x4b   :  { %2443 = vmatpush1.bf16.msra.mxu0 %v2442_v41  ;;  %v2456_v16 = vpack.c.bf16 %v145_v13, %v143_v12  ;;  %v2458_v19 = vpack.c.bf16 %v144_v18, %v142_v17  ;;  %v91_v41 = vand.u32 63, %v3169_v21  ;;  %v3310_v17 = vsel %vm82_vm10, 0.5, %v2944_v23  ;;  %v2141_v47 = vld [vmem:[%s3903_s6] sm:$0xff] }
  0x4c   :  { %2445 = vmatprep.subr.bf16.mxu0 %v2444_v46 }
  0x4d   :  { %2471 = vmatpush1.bf16.msra.mxu1 %v3134_v1  ;;  %vm3221_vm8 = vcmp.lt.s32.totalorder %v91_v41, 32 }
  0x4e   :  { %2473 = vmatprep.subr.bf16.mxu1 %v3143_v9 }
  0x4f   :  { %2447 = vmatpush1.bf16.msra.mxu0 %v2446_v54 }
  0x50   :  { %2449 = vmatprep.subr.bf16.mxu0 %v2448_v58 }
  0x51   :  { %2475 = vmatpush1.bf16.msra.mxu1 %v3152_v14 }
  0x52   :  { %2477 = vmatprep.subr.bf16.mxu1 %v3090_v38 }
  0x53   :  { %2451 = vmatpush1.bf16.msra.mxu0 %v2450_v2 }
  0x54   :  { %2453 = vmatprep.subr.bf16.mxu0 %v2452_v6  ;;  %420 = vmatmul.mubr.f32.vlgmr.msra.gmra.mrb[0].mxu1 %v2943_v7 }
  0x55   :  { %2479 = vmatpush1.bf16.msra.mxu1 %v3098_v43  ;;  %518 = vmatprep.mubr.f32.mxu1 %v2943_v7 }
  0x56   :  { %2481 = vmatprep.subr.bf16.mxu1 %v3107_v48 }
  0x57   :  { %2455 = vmatpush1.bf16.msra.mxu0 %v2454_v15 }
  0x58   :  { %2457 = vmatprep.subr.bf16.mxu0 %v2456_v16 }
  0x59   :  { %2483 = vmatpush1.bf16.msra.mxu1 %v3116_v53 }
  0x5a   :  { %2485 = vmatprep.subr.bf16.mxu1 %v3125_v60 }
  0x5b   :  { %2459 = vmatpush1.bf16.msra.mxu0 %v2458_v19  ;;  %v3313_v19 = vsel %vm82_vm10, 0.5, %v2943_v7 }
  0x5c   :  { %2509 = vmatprep.subr.bf16.mxu0 %v3090_v38 }
  0x5d   :  { %2487 = vmatpush1.bf16.msra.mxu1 %v3134_v1 }
  0x5e   :  { %2489 = vmatprep.subr.bf16.mxu1 %v3143_v9 }
  0x61   :  { %2491 = vmatpush1.bf16.msra.mxu1 %v3152_v14 }
  0x62   :  { %2493 = vmatprep.subr.bf16.mxu1 %v3090_v38 }
  0xb9   :  { %v156_v22 = vpop.permute.xlu0 %155  ;;  %v162_v25 = vpop.permute.xlu1 %161 }
  0xba   :  { %vm178_vm0 = vcmp.eq.s32.totalorder %v3169_v21, %v156_v22  ;;  %vm180_vm2 = vcmp.eq.s32.totalorder %v3169_v21, %v162_v25 }
  0xbb   :  { %2338 = vmatmul.mubr.msk.f32.vlgmr.msra.gmra.mrb[0].mxu0 %vm178_vm0, %v2944_v23 }
  0xbc   :  { %272 = vmatprep.mubr.f32.mxu0 %v2943_v7  ;;  %2511 = vmatpush1.bf16.msra.mxu0 %v3098_v43 }
  0xbd   :  { %v159_v24 = vpop.permute.xlu0 %158  ;;  %2513 = vmatprep.subr.bf16.mxu0 %v3107_v48  ;;  %v165_v26 = vpop.permute.xlu1 %164 }
  0xbe   :  { %vm179_vm1 = vcmp.eq.s32.totalorder %v3169_v21, %v159_v24  ;;  %vm181_vm3 = vcmp.eq.s32.totalorder %v3169_v21, %v165_v26 }
  0xbf   :  { %2339 = vmatmul.mubr.msk.f32.gmra.mrb[2].mxu0 %vm179_vm1, %v2944_v23 }
  0xc0   :  { %278 = vmatprep.mubr.f32.mxu0 %v2943_v7  ;;  %2515 = vmatpush1.bf16.msra.mxu0 %v3116_v53 }
  0xc1   :  { %2517 = vmatprep.subr.bf16.mxu0 %v3125_v60  ;;  %v168_v27 = vpop.permute.xlu0 %167  ;;  %v171_v28 = vpop.permute.xlu1 %170 }
  0xc2   :  { %vm182_vm4 = vcmp.eq.s32.totalorder %v3169_v21, %v168_v27  ;;  %vm183_vm5 = vcmp.eq.s32.totalorder %v3169_v21, %v171_v28 }
  0xc3   :  { %2340 = vmatmul.mubr.msk.f32.gmra.mrb[4].mxu0 %vm180_vm2, %v2944_v23 }
  0xc4   :  { %284 = vmatprep.mubr.f32.mxu0 %v2943_v7  ;;  %2519 = vmatpush1.bf16.msra.mxu0 %v3134_v1 }
  0xc5   :  { %2521 = vmatprep.subr.bf16.mxu0 %v3143_v9  ;;  %v174_v29 = vpop.permute.xlu0 %173  ;;  %v177_v30 = vpop.permute.xlu1 %176 }
  0xc6   :  { %vm184_vm6 = vcmp.eq.s32.totalorder %v3169_v21, %v174_v29  ;;  %vm185_vm7 = vcmp.eq.s32.totalorder %v3169_v21, %v177_v30 }
  0xc7   :  { %2341 = vmatmul.mubr.msk.f32.gmra.mrb[6].mxu0 %vm181_vm3, %v2944_v23 }
  0xc8   :  { %290 = vmatprep.mubr.f32.mxu0 %v2943_v7  ;;  %2523 = vmatpush1.bf16.msra.mxu0 %v3152_v14 }
  0xc9   :  { %2541 = vmatprep.subr.bf16.mxu0 %v3090_v38 }
  0xcb   :  { %2342 = vmatmul.mubr.msk.f32.gmra.mrb[8].mxu0 %vm182_vm4, %v2944_v23 }
  0xcc   :  { %296 = vmatprep.mubr.f32.mxu0 %v2943_v7 }
  0xcf   :  { %2343 = vmatmul.mubr.msk.f32.gmra.mrb[10].mxu0 %vm183_vm5, %v2944_v23 }
  0xd0   :  { %302 = vmatprep.mubr.f32.mxu0 %v2943_v7 }
  0xd3   :  { %2344 = vmatmul.mubr.msk.f32.gmra.mrb[12].mxu0 %vm184_vm6, %v2944_v23 }
  0xd4   :  { %308 = vmatprep.mubr.f32.mxu0 %v2943_v7 }
  0xd7   :  { %2345 = vmatmul.mubr.msk.f32.gmra.mrb[14].mxu0 %vm185_vm7, %v2944_v23 }
  0xd8   :  { %716 = vmatprep.mubr.f32.mxu0 %v2943_v7 }
 0x127   :  { %v421_v31 = vpop.f32.mrb[0].mxu1 }
 0x128   :  { %v423_v32 = vpop.f32.mrb[1].mxu1 }
 0x18e   :  { %v3203_v33 = vpop.f32.mrb[0].mxu0 }
 0x18f   :  { %v3205_v34 = vpop.f32.mrb[1].mxu0 }
 0x192   :  { %v3207_v35 = vpop.f32.mrb[2].mxu0 }
 0x193   :  { %v3209_v36 = vpop.f32.mrb[3].mxu0 }
 0x196   :  { %v3212_v39 = vpop.f32.mrb[4].mxu0 }
 0x197   :  { %v3214_v40 = vpop.f32.mrb[5].mxu0 }
 0x19a   :  { %v3217_v44 = vpop.f32.mrb[6].mxu0 }
 0x19b   :  { %v3219_v45 = vpop.f32.mrb[7].mxu0 }
 0x19e   :  { %v3229_v49 = vpop.f32.mrb[8].mxu0 }
 0x19f   :  { %v3231_v50 = vpop.f32.mrb[9].mxu0  ;;  %v341_v51 = vsel %vm3221_vm8, %v3217_v44, %v3229_v49  ;;  %v343_v52 = vsel %vm3221_vm8, %v3229_v49, %v3217_v44 }
 0x1a0   :  { %v342_v54 = vsel %vm3225_vm9, %v3219_v45, %v3231_v50  ;;  %v344_v55 = vsel %vm3225_vm9, %v3231_v50, %v3219_v45 }
 0x1a2   :  { %v3249_v56 = vpop.f32.mrb[10].mxu0 }
 0x1a3   :  { %v3251_v57 = vpop.f32.mrb[11].mxu0  ;;  %v339_v58 = vsel %vm3221_vm8, %v3212_v39, %v3249_v56  ;;  %v345_v59 = vsel %vm3221_vm8, %v3249_v56, %v3212_v39 }
 0x1a4   :  { %v340_v61 = vsel %vm3225_vm9, %v3214_v40, %v3251_v57  ;;  %v346_v62 = vsel %vm3225_vm9, %v3251_v57, %v3214_v40 }
 0x1a6   :  { %v3269_v63 = vpop.f32.mrb[12].mxu0 }
 0x1a7   :  { %v3271_v0 = vpop.f32.mrb[13].mxu0  ;;  %v337_v2 = vsel %vm3221_vm8, %v3207_v35, %v3269_v63  ;;  %v347_v3 = vsel %vm3221_vm8, %v3269_v63, %v3207_v35 }
 0x1a8   :  { %v338_v4 = vsel %vm3225_vm9, %v3209_v36, %v3271_v0  ;;  %v348_v5 = vsel %vm3225_vm9, %v3271_v0, %v3209_v36 }
 0x1aa   :  { %v3289_v6 = vpop.f32.mrb[14].mxu0 }
 0x1ab   :  { %v335_v8 = vsel %vm3221_vm8, %v3203_v33, %v3289_v6  ;;  %v3295_v10 = vpop.f32.mrb[15].mxu0  ;;  %v349_v11 = vsel %vm3221_vm8, %v3289_v6, %v3203_v33 }
 0x1ac   :  { %v426_v12 = vadd.f32 %v421_v31, %v335_v8  ;;  %v336_v13 = vsel %vm3225_vm9, %v3205_v34, %v3295_v10  ;;  %v350_v15 = vsel %vm3225_vm9, %v3295_v10, %v3205_v34  ;;  %v1155_v34 = vld [vmem:[#allocation5 + $0x8] sm:$0xff]  ;;  %v1157_v10 = vld [vmem:[#allocation5 + $0x18] sm:$0xff] }
 0x1ad   :  { %v427_v16 = vadd.f32 %v423_v32, %v336_v13 }
 0x1af   :  { %2769 = vtanh.f32 %v427_v16 }
 0x1b0   :  { %2771 = vtanh.f32 %v426_v12 }
 0x1b9   :  { %v2770_v18 = vpop.eup %2769 }
 0x1ba   :  { %v431_v22 = vmul.f32 %v2770_v18, %v3310_v17  ;;  %v2772_v25 = vpop.eup %2771 }
 0x1bb   :  { %v430_v26 = vmul.f32 0.5, %v2772_v25 }
 0x1bc   :  { %v433_v24 = vadd.f32 %v431_v22, %v3313_v19 }
 0x1bd   :  { %v432_v27 = vadd.f32 0.5, %v430_v26 }
 0x1be   :  { %436 = vrot.lane.b32.xlu0 %v433_v24, %s2945_s2 }
 0x1bf   :  { %v434_v23 = vmul.f32 0.0, %v432_v27 }
 0x230   :  { %v437_v28 = vpop.permute.xlu0 %436 }
 0x231   :  { %v439_v29 = vmul.f32 %v437_v28, %v432_v27 }
 0x233   :  { %441 = vrot.lane.b32.xlu1 %v439_v29, %s2945_s2 }
 0x2a5   :  { %v442_v30 = vpop.permute.xlu1 %441 }
 0x2a6   :  { %v444_v31 = vadd.f32 %v442_v30, %v434_v23 }
 0x2a8   :  { %2773 = vtanh.f32 %v444_v31 }
 0x2b2   :  { %v2774_v32 = vpop.eup %2773 }
 0x2b3   :  { %447 = vrot.lane.b32.xlu0 %v2774_v32, %s2945_s2 }
 0x325   :  { %v448_v37 = vpop.permute.xlu0 %447 }
 0x326   :  { %v3320_v41 = vmul.f32 %v448_v37, %v433_v24 }
 0x328   :  { %2346 = vmatmul.mubr.msk.f32.vlgmr.msra.gmra.mrb[2].mxu1 %vm351_vm11, %v3320_v41 }
 0x329   :  { %2495 = vmatpush1.bf16.msra.mxu1 %v3098_v43  ;;  %617 = vmatprep.mubr.f32.mxu1 %v2943_v7 }
 0x32a   :  { %2497 = vmatprep.subr.bf16.mxu1 %v3107_v48 }
 0x32d   :  { %2499 = vmatpush1.bf16.msra.mxu1 %v3116_v53 }
 0x32e   :  { %2501 = vmatprep.subr.bf16.mxu1 %v3125_v60 }
 0x331   :  { %2503 = vmatpush1.bf16.msra.mxu1 %v3134_v1 }
 0x332   :  { %2505 = vmatprep.subr.bf16.mxu1 %v3143_v9 }
 0x335   :  { %2507 = vmatpush1.bf16.msra.mxu1 %v3152_v14 }
 0x336   :  { %2525 = vmatprep.subr.bf16.mxu1 %v3090_v38 }
 0x3fb   :  { %v520_v42 = vpop.f32.mrb[2].mxu1 }
 0x3fc   :  { %v525_v8 = vadd.f32 %v520_v42, %v337_v2  ;;  %v522_v12 = vpop.f32.mrb[3].mxu1 }
 0x3fd   :  { %v526_v13 = vadd.f32 %v522_v12, %v338_v4 }
 0x3ff   :  { %2775 = vtanh.f32 %v526_v13 }
 0x400   :  { %2777 = vtanh.f32 %v525_v8 }
 0x409   :  { %v2776_v16 = vpop.eup %2775 }
 0x40a   :  { %v530_v18 = vmul.f32 %v2776_v16, %v3310_v17  ;;  %v2778_v24 = vpop.eup %2777 }
 0x40b   :  { %v529_v25 = vmul.f32 0.5, %v2778_v24 }
 0x40c   :  { %v532_v22 = vadd.f32 %v530_v18, %v3313_v19 }
 0x40d   :  { %v531_v26 = vadd.f32 0.5, %v529_v25 }
 0x40e   :  { %535 = vrot.lane.b32.xlu1 %v532_v22, %s2945_s2 }
 0x40f   :  { %v533_v29 = vmul.f32 %v531_v26, %v444_v31 }
 0x480   :  { %v536_v27 = vpop.permute.xlu1 %535 }
 0x481   :  { %v538_v28 = vmul.f32 %v536_v27, %v531_v26 }
 0x483   :  { %540 = vrot.lane.b32.xlu0 %v538_v28, %s2945_s2 }
 0x4f5   :  { %v541_v2 = vpop.permute.xlu0 %540 }
 0x4f6   :  { %v543_v23 = vadd.f32 %v541_v2, %v533_v29 }
 0x4f8   :  { %2779 = vtanh.f32 %v543_v23 }
 0x502   :  { %v2780_v4 = vpop.eup %2779 }
 0x503   :  { %546 = vrot.lane.b32.xlu1 %v2780_v4, %s2945_s2 }
 0x575   :  { %v547_v30 = vpop.permute.xlu1 %546 }
 0x576   :  { %v3338_v32 = vmul.f32 %v547_v30, %v532_v22 }
 0x578   :  { %2347 = vmatmul.mubr.msk.f32.vlgmr.msra.gmra.mrb[4].mxu1 %vm351_vm11, %v3338_v32 }
 0x579   :  { %2527 = vmatpush1.bf16.msra.mxu1 %v3098_v43  ;;  %815 = vmatprep.mubr.f32.mxu1 %v2943_v7 }
 0x57a   :  { %2529 = vmatprep.subr.bf16.mxu1 %v3107_v48 }
 0x57d   :  { %2531 = vmatpush1.bf16.msra.mxu1 %v3116_v53 }
 0x57e   :  { %2533 = vmatprep.subr.bf16.mxu1 %v3125_v60 }
 0x581   :  { %2535 = vmatpush1.bf16.msra.mxu1 %v3134_v1 }
 0x582   :  { %2537 = vmatprep.subr.bf16.mxu1 %v3143_v9 }
 0x585   :  { %2539 = vmatpush1.bf16.msra.mxu1 %v3152_v14 }
 0x586   :  { %2557 = vmatprep.subr.bf16.mxu1 %v3090_v38 }
 0x64b   :  { %v619_v31 = vpop.f32.mrb[4].mxu1 }
 0x64c   :  { %v624_v37 = vadd.f32 %v619_v31, %v339_v58  ;;  %v621_v42 = vpop.f32.mrb[5].mxu1 }
 0x64d   :  { %v625_v8 = vadd.f32 %v621_v42, %v340_v61 }
 0x64f   :  { %2781 = vtanh.f32 %v625_v8 }
 0x650   :  { %2783 = vtanh.f32 %v624_v37 }
 0x659   :  { %v2782_v12 = vpop.eup %2781 }
 0x65a   :  { %v629_v13 = vmul.f32 %v2782_v12, %v3310_v17  ;;  %v2784_v18 = vpop.eup %2783 }
 0x65b   :  { %v628_v22 = vmul.f32 0.5, %v2784_v18 }
 0x65c   :  { %v631_v16 = vadd.f32 %v629_v13, %v3313_v19 }
 0x65d   :  { %v630_v24 = vadd.f32 0.5, %v628_v22 }
 0x65e   :  { %634 = vrot.lane.b32.xlu0 %v631_v16, %s2945_s2 }
 0x65f   :  { %v632_v26 = vmul.f32 %v630_v24, %v543_v23 }
 0x6d0   :  { %v635_v58 = vpop.permute.xlu0 %634 }
 0x6d1   :  { %v637_v25 = vmul.f32 %v635_v58, %v630_v24 }
 0x6d3   :  { %639 = vrot.lane.b32.xlu1 %v637_v25, %s2945_s2 }
 0x745   :  { %v640_v27 = vpop.permute.xlu1 %639 }
 0x746   :  { %v642_v28 = vadd.f32 %v640_v27, %v632_v26 }
 0x748   :  { %2785 = vtanh.f32 %v642_v28 }
 0x752   :  { %v2786_v61 = vpop.eup %2785 }
 0x753   :  { %645 = vrot.lane.b32.xlu0 %v2786_v61, %s2945_s2 }
 0x7c5   :  { %v646_v29 = vpop.permute.xlu0 %645 }
 0x7c6   :  { %v3366_v2 = vmul.f32 %v646_v29, %v631_v16 }
 0x7c8   :  { %2348 = vmatmul.mubr.msk.f32.vlgmr.msra.gmra.mrb[16].mxu0 %vm351_vm11, %v3366_v2 }
 0x7c9   :  { %2543 = vmatpush1.bf16.msra.mxu0 %v3098_v43  ;;  %914 = vmatprep.mubr.f32.mxu0 %v2943_v7 }
 0x7ca   :  { %2545 = vmatprep.subr.bf16.mxu0 %v3107_v48 }
 0x7cd   :  { %2547 = vmatpush1.bf16.msra.mxu0 %v3116_v53 }
 0x7ce   :  { %2549 = vmatprep.subr.bf16.mxu0 %v3125_v60 }
 0x7d1   :  { %2551 = vmatpush1.bf16.msra.mxu0 %v3134_v1 }
 0x7d2   :  { %2553 = vmatprep.subr.bf16.mxu0 %v3143_v9 }
 0x7d5   :  { %2555 = vmatpush1.bf16.msra.mxu0 %v3152_v14 }
 0x7d6   :  { %2573 = vmatprep.subr.bf16.mxu0 %v3090_v38 }
 0x89b   :  { %v718_v23 = vpop.f32.mrb[16].mxu0 }
 0x89c   :  { %v723_v4 = vadd.f32 %v718_v23, %v341_v51  ;;  %v720_v30 = vpop.f32.mrb[17].mxu0 }
 0x89d   :  { %v724_v31 = vadd.f32 %v720_v30, %v342_v54 }
 0x89f   :  { %2787 = vtanh.f32 %v724_v31 }
 0x8a0   :  { %2789 = vtanh.f32 %v723_v4 }
 0x8a9   :  { %v2788_v37 = vpop.eup %2787 }
 0x8aa   :  { %v728_v42 = vmul.f32 %v2788_v37, %v3310_v17  ;;  %v2790_v8 = vpop.eup %2789 }
 0x8ab   :  { %v727_v12 = vmul.f32 0.5, %v2790_v8 }
 0x8ac   :  { %v730_v38 = vadd.f32 %v728_v42, %v3313_v19 }
 0x8ad   :  { %v729_v13 = vadd.f32 0.5, %v727_v12 }
 0x8ae   :  { %733 = vrot.lane.b32.xlu1 %v730_v38, %s2945_s2 }
 0x8af   :  { %v731_v18 = vmul.f32 %v729_v13, %v642_v28 }
 0x920   :  { %v734_v51 = vpop.permute.xlu1 %733 }
 0x921   :  { %v736_v16 = vmul.f32 %v734_v51, %v729_v13 }
 0x923   :  { %738 = vrot.lane.b32.xlu0 %v736_v16, %s2945_s2 }
 0x995   :  { %v739_v22 = vpop.permute.xlu0 %738 }
 0x996   :  { %v741_v24 = vadd.f32 %v739_v22, %v731_v18 }
 0x998   :  { %2791 = vtanh.f32 %v741_v24 }
 0x9a2   :  { %v2792_v54 = vpop.eup %2791 }
 0x9a3   :  { %744 = vrot.lane.b32.xlu1 %v2792_v54, %s2945_s2 }
 0xa15   :  { %v745_v58 = vpop.permute.xlu1 %744 }
 0xa16   :  { %v3394_v25 = vmul.f32 %v745_v58, %v730_v38 }
 0xa18   :  { %2349 = vmatmul.mubr.msk.f32.vlgmr.msra.gmra.mrb[6].mxu1 %vm351_vm11, %v3394_v25 }
 0xa19   :  { %2559 = vmatpush1.bf16.msra.mxu1 %v3098_v43  ;;  %1013 = vmatprep.mubr.f32.mxu1 %v2943_v7 }
 0xa1a   :  { %2561 = vmatprep.subr.bf16.mxu1 %v3107_v48 }
 0xa1d   :  { %2563 = vmatpush1.bf16.msra.mxu1 %v3116_v53 }
 0xa1e   :  { %2565 = vmatprep.subr.bf16.mxu1 %v3125_v60 }
 0xa21   :  { %2567 = vmatpush1.bf16.msra.mxu1 %v3134_v1 }
 0xa22   :  { %2569 = vmatprep.subr.bf16.mxu1 %v3143_v9 }
 0xa25   :  { %2571 = vmatpush1.bf16.msra.mxu1 %v3152_v14 }
 0xaeb   :  { %v817_v26 = vpop.f32.mrb[6].mxu1 }
 0xaec   :  { %v822_v27 = vadd.f32 %v817_v26, %v343_v52  ;;  %v819_v28 = vpop.f32.mrb[7].mxu1 }
 0xaed   :  { %v823_v61 = vadd.f32 %v819_v28, %v344_v55 }
 0xaef   :  { %2793 = vtanh.f32 %v823_v61 }
 0xaf0   :  { %2795 = vtanh.f32 %v822_v27 }
 0xaf9   :  { %v2794_v29 = vpop.eup %2793 }
 0xafa   :  { %v827_v23 = vmul.f32 %v2794_v29, %v3310_v17  ;;  %v2796_v30 = vpop.eup %2795 }
 0xafb   :  { %v826_v31 = vmul.f32 0.5, %v2796_v30 }
 0xafc   :  { %v829_v4 = vadd.f32 %v827_v23, %v3313_v19 }
 0xafd   :  { %v828_v44 = vadd.f32 0.5, %v826_v31 }
 0xafe   :  { %832 = vrot.lane.b32.xlu0 %v829_v4, %s2945_s2 }
 0xaff   :  { %v830_v37 = vmul.f32 %v828_v44, %v741_v24 }
 0xb70   :  { %v833_v49 = vpop.permute.xlu0 %832 }
 0xb71   :  { %v835_v52 = vmul.f32 %v833_v49, %v828_v44 }
 0xb73   :  { %837 = vrot.lane.b32.xlu1 %v835_v52, %s2945_s2 }
 0xbe5   :  { %v838_v42 = vpop.permute.xlu1 %837 }
 0xbe6   :  { %v840_v45 = vadd.f32 %v838_v42, %v830_v37 }
 0xbe8   :  { %2797 = vtanh.f32 %v840_v45 }
 0xbf2   :  { %v2798_v50 = vpop.eup %2797 }
 0xbf3   :  { %843 = vrot.lane.b32.xlu0 %v2798_v50, %s2945_s2 }
 0xc65   :  { %v844_v55 = vpop.permute.xlu0 %843 }
 0xc66   :  { %v3421_v38 = vmul.f32 %v844_v55, %v829_v4  ;;  %v2588_v55 = vpack.c.bf16 %v1157_v10, %v1155_v34  ;;  %v1331_v34 = vld [vmem:[#allocation7 + $0x60] sm:$0xff]  ;;  %v1333_v10 = vld [vmem:[#allocation7 + $0x70] sm:$0xff] }
 0xc68   :  { %2350 = vmatmul.mubr.msk.f32.vlgmr.msra.gmra.mrb[18].mxu0 %vm351_vm11, %v3421_v38  ;;  %2589 = vmatprep.subr.bf16.mxu1 %v2588_v55 }
 0xc69   :  { %2575 = vmatpush1.bf16.msra.mxu0 %v3098_v43  ;;  %1112 = vmatprep.mubr.f32.mxu0 %v2943_v7 }
 0xc6a   :  { %2577 = vmatprep.subr.bf16.mxu0 %v3107_v48 }
 0xc6d   :  { %2579 = vmatpush1.bf16.msra.mxu0 %v3116_v53 }
 0xc6e   :  { %2581 = vmatprep.subr.bf16.mxu0 %v3125_v60 }
 0xc71   :  { %2583 = vmatpush1.bf16.msra.mxu0 %v3134_v1 }
 0xc72   :  { %2585 = vmatprep.subr.bf16.mxu0 %v3143_v9 }
 0xc75   :  { %2587 = vmatpush1.bf16.msra.mxu0 %v3152_v14 }
 0xd3b   :  { %v916_v8 = vpop.f32.mrb[18].mxu0 }
 0xd3c   :  { %v921_v43 = vadd.f32 %v916_v8, %v345_v59  ;;  %v918_v12 = vpop.f32.mrb[19].mxu0  ;;  %v1156_v8 = vld [vmem:[#allocation5 + $0x10] sm:$0xff] }
 0xd3d   :  { %v922_v48 = vadd.f32 %v918_v12, %v346_v62  ;;  %v1161_v12 = vld [vmem:[#allocation5 + $0x38] sm:$0xff] }
 0xd3f   :  { %2799 = vtanh.f32 %v922_v48 }
 0xd40   :  { %2801 = vtanh.f32 %v921_v43  ;;  %v1159_v43 = vld [vmem:[#allocation5 + $0x28] sm:$0xff] }
 0xd49   :  { %v2800_v53 = vpop.eup %2799 }
 0xd4a   :  { %v926_v60 = vmul.f32 %v2800_v53, %v3310_v17  ;;  %v2802_v9 = vpop.eup %2801  ;;  %v2592_v53 = vpack.c.bf16 %v1161_v12, %v1159_v43 }
 0xd4b   :  { %v925_v14 = vmul.f32 0.5, %v2802_v9  ;;  %v1163_v9 = vld [vmem:[#allocation5 + $0x48] sm:$0xff] }
 0xd4c   :  { %v928_v1 = vadd.f32 %v926_v60, %v3313_v19  ;;  %v1158_v60 = vld [vmem:[#allocation5 + $0x20] sm:$0xff] }
 0xd4d   :  { %v927_v39 = vadd.f32 0.5, %v925_v14  ;;  %v1165_v14 = vld [vmem:[#allocation5 + $0x58] sm:$0xff] }
 0xd4e   :  { %931 = vrot.lane.b32.xlu1 %v928_v1, %s2945_s2 }
 0xd4f   :  { %v929_v13 = vmul.f32 %v927_v39, %v840_v45 }
 0xdc0   :  { %v932_v56 = vpop.permute.xlu1 %931 }
 0xdc1   :  { %v934_v59 = vmul.f32 %v932_v56, %v927_v39  ;;  %v2596_v56 = vpack.c.bf16 %v1165_v14, %v1163_v9 }
 0xdc3   :  { %936 = vrot.lane.b32.xlu0 %v934_v59, %s2945_s2  ;;  %v1162_v59 = vld [vmem:[#allocation5 + $0x40] sm:$0xff] }
 0xe35   :  { %v937_v51 = vpop.permute.xlu0 %936 }
 0xe36   :  { %v939_v40 = vadd.f32 %v937_v51, %v929_v13  ;;  %v1164_v13 = vld [vmem:[#allocation5 + $0x50] sm:$0xff]  ;;  %v1167_v51 = vld [vmem:[#allocation5 + $0x68] sm:$0xff] }
 0xe38   :  { %2803 = vtanh.f32 %v939_v40 }
 0xe42   :  { %v2804_v57 = vpop.eup %2803 }
 0xe43   :  { %942 = vrot.lane.b32.xlu1 %v2804_v57, %s2945_s2  ;;  %v2598_v57 = vpack.c.bf16 %v1164_v13, %v1162_v59 }
 0xeb5   :  { %v943_v62 = vpop.permute.xlu1 %942 }
 0xeb6   :  { %v3448_v16 = vmul.f32 %v943_v62, %v928_v1  ;;  %v1160_v1 = vld [vmem:[#allocation5 + $0x30] sm:$0xff] }
 0xeb7   :  { %v2594_v39 = vpack.c.bf16 %v1160_v1, %v1158_v60 }
 0xeb8   :  { %2351 = vmatmul.mubr.msk.f32.vlgmr.msra.gmra.mrb[8].mxu1 %vm351_vm11, %v3448_v16  ;;  %v1151_v60 = vsel %vm113_vm12, %v3448_v16, %v3366_v2 }
 0xeb9   :  { %1270 = vmatprep.mubr.f32.mxu1 %v2943_v7 }
 0xf8b   :  { %v1015_v18 = vpop.f32.mrb[8].mxu1 }
 0xf8c   :  { %v1020_v22 = vadd.f32 %v1015_v18, %v347_v3  ;;  %v1017_v24 = vpop.f32.mrb[9].mxu1  ;;  %v1166_v18 = vld [vmem:[#allocation5 + $0x60] sm:$0xff] }
 0xf8d   :  { %v1021_v54 = vadd.f32 %v1017_v24, %v348_v5 }
 0xf8f   :  { %2805 = vtanh.f32 %v1021_v54 }
 0xf90   :  { %2807 = vtanh.f32 %v1020_v22  ;;  %v1168_v22 = vld [vmem:[#allocation5 + $0x70] sm:$0xff] }
 0xf91   :  { %v2602_v54 = vpack.c.bf16 %v1168_v22, %v1166_v18 }
 0xf99   :  { %v2806_v58 = vpop.eup %2805 }
 0xf9a   :  { %v1025_v26 = vmul.f32 %v2806_v58, %v3310_v17  ;;  %v2808_v28 = vpop.eup %2807 }
 0xf9b   :  { %v1024_v61 = vmul.f32 0.5, %v2808_v28  ;;  %v1320_v28 = vld [vmem:[#allocation7 + $0x8] sm:$0xff] }
 0xf9c   :  { %v1027_v27 = vadd.f32 %v1025_v26, %v3313_v19 }
 0xf9d   :  { %v1026_v35 = vadd.f32 0.5, %v1024_v61  ;;  %v1322_v61 = vld [vmem:[#allocation7 + $0x18] sm:$0xff] }
 0xf9e   :  { %1030 = vrot.lane.b32.xlu0 %v1027_v27, %s2945_s2 }
 0xf9f   :  { %v1028_v29 = vmul.f32 %v1026_v35, %v939_v40  ;;  %v1169_v40 = vld [vmem:[#allocation5 + $0x78] sm:$0xff] }
 0xfa0   :  { %v2600_v62 = vpack.c.bf16 %v1169_v40, %v1167_v51 }
0x1010   :  { %v1031_v63 = vpop.permute.xlu0 %1030 }
0x1011   :  { %v1033_v3 = vmul.f32 %v1031_v63, %v1026_v35  ;;  %v3491_v35 = vpack.c.bf16 %v1322_v61, %v1320_v28  ;;  %v1319_v63 = vld [vmem:[#allocation7] sm:$0xff] }
0x1013   :  { %1035 = vrot.lane.b32.xlu1 %v1033_v3, %s2945_s2  ;;  %v1321_v3 = vld [vmem:[#allocation7 + $0x10] sm:$0xff]  ;;  %2605 = vmatprep.subr.bf16.mxu0 %v3491_v35 }
0x1085   :  { %v1036_v23 = vpop.permute.xlu1 %1035 }
0x1086   :  { %v1038_v36 = vadd.f32 %v1036_v23, %v1028_v29  ;;  %v3493_v29 = vpack.c.bf16 %v1321_v3, %v1319_v63  ;;  %v1324_v23 = vld [vmem:[#allocation7 + $0x28] sm:$0xff] }
0x1088   :  { %2809 = vtanh.f32 %v1038_v36 }
0x1092   :  { %v2810_v0 = vpop.eup %2809 }
0x1093   :  { %1041 = vrot.lane.b32.xlu0 %v2810_v0, %s2945_s2 }
0x1105   :  { %v1042_v5 = vpop.permute.xlu0 %1041 }
0x1106   :  { %v3468_v4 = vmul.f32 %v1042_v5, %v1027_v27  ;;  %v1323_v5 = vld [vmem:[#allocation7 + $0x20] sm:$0xff] }
0x1108   :  { %2352 = vmatmul.mubr.msk.f32.vlgmr.msra.gmra.mrb[20].mxu0 %vm351_vm11, %v3468_v4  ;;  %v1147_v12 = vsel %vm113_vm12, %v3338_v32, %v3468_v4  ;;  %v1152_v1 = vsel %vm113_vm12, %v3468_v4, %v3338_v32  ;;  %v1170_v32 = vld [vmem:[%s3902_s5] sm:$0x3] }
0x1109   :  { %1415 = vmatprep.mubr.f32.mxu0 %v2943_v7  ;;  %2607 = vmatpush1.bf16.msra.mxu0 %v3493_v29 }
0x11db   :  { %v1114_v30 = vpop.f32.mrb[20].mxu0 }
0x11dc   :  { %v1119_v31 = vadd.f32 %v1114_v30, %v349_v11  ;;  %v1116_v44 = vpop.f32.mrb[21].mxu0  ;;  %v1325_v30 = vld [vmem:[#allocation7 + $0x30] sm:$0xff] }
0x11dd   :  { %v1120_v49 = vadd.f32 %v1116_v44, %v350_v15  ;;  %v1154_v15 = vld [vmem:[#allocation5] sm:$0xff]  ;;  %v1328_v44 = vld [vmem:[#allocation7 + $0x48] sm:$0xff] }
0x11de   :  { %v2590_v48 = vpack.c.bf16 %v1156_v8, %v1154_v15  ;;  %v3512_v15 = vpack.c.bf16 %v1333_v10, %v1331_v34 }
0x11df   :  { %2811 = vtanh.f32 %v1120_v49  ;;  %v1330_v49 = vld [vmem:[#allocation7 + $0x58] sm:$0xff] }
0x11e0   :  { %2813 = vtanh.f32 %v1119_v31  ;;  %2591 = vmatpush1.bf16.msra.mxu1 %v2590_v48  ;;  %v3500_v31 = vpack.c.bf16 %v1325_v30, %v1323_v5  ;;  %v1149_v48 = vsel %vm113_vm12, %v3394_v25, %v3421_v38 }
0x11e1   :  { %2593 = vmatprep.subr.bf16.mxu1 %v2592_v53  ;;  %v1150_v53 = vsel %vm113_vm12, %v3421_v38, %v3394_v25 }
0x11e4   :  { %2595 = vmatpush1.bf16.msra.mxu1 %v2594_v39 }
0x11e5   :  { %2597 = vmatprep.subr.bf16.mxu1 %v2596_v56 }
0x11e8   :  { %2599 = vmatpush1.bf16.msra.mxu1 %v2598_v57 }
0x11e9   :  { %v2812_v52 = vpop.eup %2811  ;;  %2601 = vmatprep.subr.bf16.mxu1 %v2600_v62 }
0x11ea   :  { %v1124_v37 = vmul.f32 %v2812_v52, %v3310_v17  ;;  %v2814_v33 = vpop.eup %2813  ;;  %v3504_v52 = vpack.c.bf16 %v1330_v49, %v1328_v44 }
0x11eb   :  { %v1123_v6 = vmul.f32 0.5, %v2814_v33  ;;  %v1329_v33 = vld [vmem:[#allocation7 + $0x50] sm:$0xff] }
0x11ec   :  { %v3485_v42 = vadd.f32 %v1124_v37, %v3313_v19  ;;  %2603 = vmatpush1.bf16.msra.mxu1 %v2602_v54  ;;  %v1327_v37 = vld [vmem:[#allocation7 + $0x40] sm:$0xff] }
0x11ed   :  { %v1125_v11 = vadd.f32 0.5, %v1123_v6  ;;  %2637 = vmatprep.subr.bf16.mxu1 %v3491_v35  ;;  %v3506_v6 = vpack.c.bf16 %v1329_v33, %v1327_v37 }
0x11ee   :  { %1129 = vrot.lane.b32.xlu1 %v3485_v42, %s2945_s2 }
0x11ef   :  { %v1127_v24 = vmul.f32 %v1125_v11, %v1038_v36  ;;  %v1326_v36 = vld [vmem:[#allocation7 + $0x38] sm:$0xff] }
0x11f0   :  { %v3498_v0 = vpack.c.bf16 %v1326_v36, %v1324_v23 }
0x11f2   :  { %2609 = vmatprep.subr.bf16.mxu0 %v3498_v0 }
0x11f3   :  { %2611 = vmatpush1.bf16.msra.mxu0 %v3500_v31 }
0x11f4   :  { %2613 = vmatprep.subr.bf16.mxu0 %v3504_v52 }
0x11f7   :  { %2615 = vmatpush1.bf16.msra.mxu0 %v3506_v6 }
0x1260   :  { %v1130_v45 = vpop.permute.xlu1 %1129 }
0x1261   :  { %v1132_v50 = vmul.f32 %v1130_v45, %v1125_v11  ;;  %v1332_v11 = vld [vmem:[#allocation7 + $0x68] sm:$0xff]  ;;  %v1334_v45 = vld [vmem:[#allocation7 + $0x78] sm:$0xff] }
0x1263   :  { %1134 = vrot.lane.b32.xlu0 %v1132_v50, %s2945_s2  ;;  %v3510_v50 = vpack.c.bf16 %v1334_v45, %v1332_v11 }
0x1265   :  { %2617 = vmatprep.subr.bf16.mxu0 %v3510_v50 }
0x1266   :  { %2619 = vmatpush1.bf16.msra.mxu0 %v3512_v15 }
0x1267   :  { %2621 = vmatprep.subr.bf16.mxu0 %v3491_v35 }
0x1269   :  { %1416 = vmatmul.mubr.f32.vlgmr.msra.gmra.mrb[22].mxu0 %v2943_v7 }
0x126a   :  { %2623 = vmatpush1.bf16.msra.mxu0 %v3493_v29  ;;  %1514 = vmatprep.mubr.f32.mxu0 %v2943_v7 }
0x126b   :  { %2625 = vmatprep.subr.bf16.mxu0 %v3498_v0 }
0x126e   :  { %2627 = vmatpush1.bf16.msra.mxu0 %v3500_v31 }
0x126f   :  { %2629 = vmatprep.subr.bf16.mxu0 %v3504_v52 }
0x1272   :  { %2631 = vmatpush1.bf16.msra.mxu0 %v3506_v6 }
0x1273   :  { %2633 = vmatprep.subr.bf16.mxu0 %v3510_v50 }
0x1276   :  { %2635 = vmatpush1.bf16.msra.mxu0 %v3512_v15 }
0x1277   :  { %2653 = vmatprep.subr.bf16.mxu0 %v3491_v35 }
0x12d5   :  { %v1135_v58 = vpop.permute.xlu0 %1134 }
0x12d6   :  { %v1137_v26 = vadd.f32 %v1135_v58, %v1127_v24 }
0x12d8   :  { %2815 = vtanh.f32 %v1137_v26 }
0x12e2   :  { %v2816_v27 = vpop.eup %2815 }
0x12e3   :  { %1140 = vrot.lane.b32.xlu1 %v2816_v27, %s2945_s2 }
0x1355   :  { %v1141_v55 = vpop.permute.xlu1 %1140 }
0x1356   :  { %v1143_v8 = vmul.f32 %v1141_v55, %v3485_v42  ;;  %v1148_v42 = vsel %vm113_vm12, %v3366_v2, %v3448_v16  ;;  %v1417_v2 = vpop.f32.mrb[22].mxu0  ;;  %v1173_v16 = vshrl.u32 %v78_v20, 7 }
0x1357   :  { %v1419_v38 = vpop.f32.mrb[23].mxu0 }
0x1358   :  { %v1146_v43 = vsel %vm113_vm12, %v3320_v41, %v1143_v8  ;;  %v1153_v25 = vsel %vm113_vm12, %v1143_v8, %v3320_v41  ;;  %v1174_v9 = vsub.s32 0, %v1173_v16  ;;  %v1178_v14 = vsub.s32 1, %v1173_v16 }
0x1359   :  { %2353 = vmatmul.mubr.msk.f32.vlgmr.msra.gmra.mrb[10].mxu1 %vm351_vm11, %v1146_v43 }
0x135a   :  { %1276 = vmatprep.mubr.f32.mxu1 %v2943_v7  ;;  %2639 = vmatpush1.bf16.msra.mxu1 %v3493_v29  ;;  %v1175_v56 = vrot.slane %v1170_v32, %v1174_v9  ;;  %v1179_v59 = vrot.slane %v1170_v32, %v1178_v14 }
0x135b   :  { %2641 = vmatprep.subr.bf16.mxu1 %v3498_v0 }
0x135d   :  { %2354 = vmatmul.mubr.msk.f32.gmra.mrb[12].mxu1 %vm351_vm11, %v1147_v12 }
0x135e   :  { %1282 = vmatprep.mubr.f32.mxu1 %v2943_v7  ;;  %2643 = vmatpush1.bf16.msra.mxu1 %v3500_v31 }
0x135f   :  { %2645 = vmatprep.subr.bf16.mxu1 %v3504_v52 }
0x1361   :  { %2355 = vmatmul.mubr.msk.f32.gmra.mrb[14].mxu1 %vm351_vm11, %v1148_v42 }
0x1362   :  { %1288 = vmatprep.mubr.f32.mxu1 %v2943_v7  ;;  %2647 = vmatpush1.bf16.msra.mxu1 %v3506_v6 }
0x1363   :  { %2649 = vmatprep.subr.bf16.mxu1 %v3510_v50 }
0x1365   :  { %2356 = vmatmul.mubr.msk.f32.gmra.mrb[16].mxu1 %vm351_vm11, %v1149_v48 }
0x1366   :  { %1294 = vmatprep.mubr.f32.mxu1 %v2943_v7  ;;  %2651 = vmatpush1.bf16.msra.mxu1 %v3512_v15 }
0x1367   :  { %2669 = vmatprep.subr.bf16.mxu1 %v3491_v35 }
0x1369   :  { %2357 = vmatmul.mubr.msk.f32.gmra.mrb[18].mxu1 %vm351_vm11, %v1150_v53 }
0x136a   :  { %1300 = vmatprep.mubr.f32.mxu1 %v2943_v7 }
0x136d   :  { %2358 = vmatmul.mubr.msk.f32.gmra.mrb[20].mxu1 %vm351_vm11, %v1151_v60 }
0x136e   :  { %1306 = vmatprep.mubr.f32.mxu1 %v2943_v7 }
0x1371   :  { %2359 = vmatmul.mubr.msk.f32.gmra.mrb[22].mxu1 %vm351_vm11, %v1152_v1 }
0x1372   :  { %1312 = vmatprep.mubr.f32.mxu1 %v2943_v7 }
0x1375   :  { %2360 = vmatmul.mubr.msk.f32.gmra.mrb[24].mxu1 %vm351_vm11, %v1153_v25 }
0x1376   :  { %1613 = vmatprep.mubr.f32.mxu1 %v2943_v7 }
0x142c   :  { %v1272_v4 = vpop.f32.mrb[10].mxu1 }
0x142d   :  { %v1274_v39 = vpop.f32.mrb[11].mxu1  ;;  %v3659_v60 = vadd.f32 %v1272_v4, %v1175_v56 }
0x142e   :  { %v3663_v16 = vadd.f32 %v1274_v39, %v1179_v59 }
0x1430   :  { %v1278_v13 = vpop.f32.mrb[12].mxu1 }
0x1431   :  { %v3587_v41 = vadd.f32 %v1278_v13, %v1175_v56  ;;  %v1280_v51 = vpop.f32.mrb[13].mxu1 }
0x1432   :  { %v3589_v40 = vadd.f32 %v1280_v51, %v1179_v59 }
0x1434   :  { %v1284_v57 = vpop.f32.mrb[14].mxu1 }
0x1435   :  { %v3591_v62 = vadd.f32 %v1284_v57, %v1175_v56  ;;  %v1286_v20 = vpop.f32.mrb[15].mxu1 }
0x1436   :  { %v3593_v18 = vadd.f32 %v1286_v20, %v1179_v59 }
0x1438   :  { %v1290_v22 = vpop.f32.mrb[16].mxu1 }
0x1439   :  { %v3595_v24 = vadd.f32 %v1290_v22, %v1175_v56  ;;  %v1292_v54 = vpop.f32.mrb[17].mxu1 }
0x143a   :  { %v3597_v58 = vadd.f32 %v1292_v54, %v1179_v59 }
0x143c   :  { %v1296_v26 = vpop.f32.mrb[18].mxu1 }
0x143d   :  { %v3599_v27 = vadd.f32 %v1296_v26, %v1175_v56  ;;  %v1298_v28 = vpop.f32.mrb[19].mxu1 }
0x143e   :  { %v3601_v61 = vadd.f32 %v1298_v28, %v1179_v59 }
0x143f   :  { %v1341_v63 = vsel %vm3221_vm8, %v3595_v24, %v3599_v27  ;;  %v1343_v3 = vsel %vm3221_vm8, %v3599_v27, %v3595_v24 }
0x1440   :  { %v1302_v23 = vpop.f32.mrb[20].mxu1  ;;  %v1342_v36 = vsel %vm3225_vm9, %v3597_v58, %v3601_v61  ;;  %v1344_v5 = vsel %vm3225_vm9, %v3601_v61, %v3597_v58 }
0x1441   :  { %v3619_v30 = vadd.f32 %v1302_v23, %v1175_v56  ;;  %v1304_v44 = vpop.f32.mrb[21].mxu1 }
0x1442   :  { %v3621_v49 = vadd.f32 %v1304_v44, %v1179_v59 }
0x1443   :  { %v1339_v37 = vsel %vm3221_vm8, %v3591_v62, %v3619_v30  ;;  %v1345_v33 = vsel %vm3221_vm8, %v3619_v30, %v3591_v62 }
0x1444   :  { %v1308_v11 = vpop.f32.mrb[22].mxu1  ;;  %v1340_v45 = vsel %vm3225_vm9, %v3593_v18, %v3621_v49  ;;  %v1346_v34 = vsel %vm3225_vm9, %v3621_v49, %v3593_v18 }
0x1445   :  { %v3639_v10 = vadd.f32 %v1308_v11, %v1175_v56  ;;  %v1310_v55 = vpop.f32.mrb[23].mxu1 }
0x1446   :  { %v3641_v8 = vadd.f32 %v1310_v55, %v1179_v59 }
0x1447   :  { %v1337_v43 = vsel %vm3221_vm8, %v3587_v41, %v3639_v10  ;;  %v1347_v12 = vsel %vm3221_vm8, %v3639_v10, %v3587_v41 }
0x1448   :  { %v1314_v42 = vpop.f32.mrb[24].mxu1  ;;  %v1338_v48 = vsel %vm3225_vm9, %v3589_v40, %v3641_v8  ;;  %v1348_v53 = vsel %vm3225_vm9, %v3641_v8, %v3589_v40 }
0x1449   :  { %v3661_v1 = vadd.f32 %v1314_v42, %v1175_v56  ;;  %v1316_v25 = vpop.f32.mrb[25].mxu1 }
0x144a   :  { %v3665_v9 = vadd.f32 %v1316_v25, %v1179_v59 }
0x144b   :  { %v1335_v32 = vsel %vm3221_vm8, %v3659_v60, %v3661_v1  ;;  %v1349_v14 = vsel %vm3221_vm8, %v3661_v1, %v3659_v60 }
0x144c   :  { %v1422_v13 = vadd.f32 %v1417_v2, %v1335_v32  ;;  %v1336_v4 = vsel %vm3225_vm9, %v3663_v16, %v3665_v9  ;;  %v1350_v39 = vsel %vm3225_vm9, %v3665_v9, %v3663_v16  ;;  %v2946_v16 = vmov 0.0|0.0  }
0x144d   :  { %v1423_v56 = vadd.f32 %v1419_v38, %v1336_v4 }
0x144f   :  { %2817 = vtanh.f32 %v1423_v56 }
0x1450   :  { %2819 = vtanh.f32 %v1422_v13 }
0x1459   :  { %v2818_v59 = vpop.eup %2817 }
0x145a   :  { %v1427_v51 = vmul.f32 %v2818_v59, %v3310_v17  ;;  %v2820_v2 = vpop.eup %2819 }
0x145b   :  { %v1426_v20 = vmul.f32 0.5, %v2820_v2 }
0x145c   :  { %v1429_v57 = vadd.f32 %v1427_v51, %v3313_v19 }
0x145d   :  { %v1428_v22 = vadd.f32 0.5, %v1426_v20 }
0x145e   :  { %1432 = vrot.lane.b32.xlu0 %v1429_v57, %s2945_s2 }
0x145f   :  { %v1430_v28 = vmul.f32 0.0, %v1428_v22 }
0x14d0   :  { %v1433_v54 = vpop.permute.xlu0 %1432 }
0x14d1   :  { %v1435_v26 = vmul.f32 %v1433_v54, %v1428_v22 }
0x14d3   :  { %1437 = vrot.lane.b32.xlu1 %v1435_v26, %s2945_s2 }
0x1545   :  { %v1438_v23 = vpop.permute.xlu1 %1437 }
0x1546   :  { %v1440_v44 = vadd.f32 %v1438_v23, %v1430_v28 }
0x1548   :  { %2821 = vtanh.f32 %v1440_v44 }
0x1552   :  { %v2822_v38 = vpop.eup %2821 }
0x1553   :  { %1443 = vrot.lane.b32.xlu0 %v2822_v38, %s2945_s2 }
0x15c5   :  { %v1444_v11 = vpop.permute.xlu0 %1443 }
0x15c6   :  { %v3688_v55 = vmul.f32 %v1444_v11, %v1429_v57 }
0x15c8   :  { %2361 = vmatmul.mubr.msk.f32.vlgmr.msra.gmra.mrb[24].mxu0 %vm351_vm11, %v3688_v55 }
0x15c9   :  { %2655 = vmatpush1.bf16.msra.mxu0 %v3493_v29  ;;  %1712 = vmatprep.mubr.f32.mxu0 %v2943_v7 }
0x15ca   :  { %2657 = vmatprep.subr.bf16.mxu0 %v3498_v0 }
0x15cd   :  { %2659 = vmatpush1.bf16.msra.mxu0 %v3500_v31 }
0x15ce   :  { %2661 = vmatprep.subr.bf16.mxu0 %v3504_v52 }
0x15d1   :  { %2663 = vmatpush1.bf16.msra.mxu0 %v3506_v6 }
0x15d2   :  { %2665 = vmatprep.subr.bf16.mxu0 %v3510_v50 }
0x15d5   :  { %2667 = vmatpush1.bf16.msra.mxu0 %v3512_v15 }
0x15d6   :  { %2685 = vmatprep.subr.bf16.mxu0 %v3491_v35 }
0x169b   :  { %v1516_v42 = vpop.f32.mrb[24].mxu0 }
0x169c   :  { %v1521_v25 = vadd.f32 %v1516_v42, %v1337_v43  ;;  %v1518_v32 = vpop.f32.mrb[25].mxu0 }
0x169d   :  { %v1522_v13 = vadd.f32 %v1518_v32, %v1338_v48 }
0x169f   :  { %2823 = vtanh.f32 %v1522_v13 }
0x16a0   :  { %2825 = vtanh.f32 %v1521_v25 }
0x16a9   :  { %v2824_v4 = vpop.eup %2823 }
0x16aa   :  { %v1526_v56 = vmul.f32 %v2824_v4, %v3310_v17  ;;  %v2826_v51 = vpop.eup %2825 }
0x16ab   :  { %v1525_v57 = vmul.f32 0.5, %v2826_v51 }
0x16ac   :  { %v1528_v59 = vadd.f32 %v1526_v56, %v3313_v19 }
0x16ad   :  { %v1527_v2 = vadd.f32 0.5, %v1525_v57 }
0x16ae   :  { %1531 = vrot.lane.b32.xlu1 %v1528_v59, %s2945_s2 }
0x16af   :  { %v1529_v54 = vmul.f32 %v1527_v2, %v1440_v44 }
0x1720   :  { %v1532_v20 = vpop.permute.xlu1 %1531 }
0x1721   :  { %v1534_v22 = vmul.f32 %v1532_v20, %v1527_v2 }
0x1723   :  { %1536 = vrot.lane.b32.xlu0 %v1534_v22, %s2945_s2 }
0x1795   :  { %v1537_v43 = vpop.permute.xlu0 %1536 }
0x1796   :  { %v1539_v26 = vadd.f32 %v1537_v43, %v1529_v54 }
0x1798   :  { %2827 = vtanh.f32 %v1539_v26 }
0x17a2   :  { %v2828_v48 = vpop.eup %2827 }
0x17a3   :  { %1542 = vrot.lane.b32.xlu1 %v2828_v48, %s2945_s2 }
0x1815   :  { %v1543_v28 = vpop.permute.xlu1 %1542 }
0x1816   :  { %v1545_v23 = vmul.f32 %v1543_v28, %v1528_v59 }
0x1818   :  { %2362 = vmatmul.mubr.msk.f32.vlgmr.msra.gmra.mrb[26].mxu1 %vm351_vm11, %v1545_v23 }
0x1819   :  { %2671 = vmatpush1.bf16.msra.mxu1 %v3493_v29  ;;  %1811 = vmatprep.mubr.f32.mxu1 %v2943_v7 }
0x181a   :  { %2673 = vmatprep.subr.bf16.mxu1 %v3498_v0 }
0x181d   :  { %2675 = vmatpush1.bf16.msra.mxu1 %v3500_v31 }
0x181e   :  { %2677 = vmatprep.subr.bf16.mxu1 %v3504_v52 }
0x1821   :  { %2679 = vmatpush1.bf16.msra.mxu1 %v3506_v6 }
0x1822   :  { %2681 = vmatprep.subr.bf16.mxu1 %v3510_v50 }
0x1825   :  { %2683 = vmatpush1.bf16.msra.mxu1 %v3512_v15 }
0x1826   :  { %2701 = vmatprep.subr.bf16.mxu1 %v3491_v35 }
0x18eb   :  { %v1615_v44 = vpop.f32.mrb[26].mxu1 }
0x18ec   :  { %v1620_v38 = vadd.f32 %v1615_v44, %v1339_v37  ;;  %v1617_v11 = vpop.f32.mrb[27].mxu1 }
0x18ed   :  { %v1621_v42 = vadd.f32 %v1617_v11, %v1340_v45 }
0x18ef   :  { %2829 = vtanh.f32 %v1621_v42 }
0x18f0   :  { %2831 = vtanh.f32 %v1620_v38 }
0x18f9   :  { %v2830_v25 = vpop.eup %2829 }
0x18fa   :  { %v1625_v32 = vmul.f32 %v2830_v25, %v3310_v17  ;;  %v2832_v4 = vpop.eup %2831 }
0x18fb   :  { %v1624_v56 = vmul.f32 0.5, %v2832_v4 }
0x18fc   :  { %v1627_v13 = vadd.f32 %v1625_v32, %v3313_v19 }
0x18fd   :  { %v1626_v59 = vadd.f32 0.5, %v1624_v56 }
0x18fe   :  { %1630 = vrot.lane.b32.xlu0 %v1627_v13, %s2945_s2 }
0x18ff   :  { %v1628_v57 = vmul.f32 %v1626_v59, %v1539_v26 }
0x1970   :  { %v1631_v37 = vpop.permute.xlu0 %1630 }
0x1971   :  { %v1633_v51 = vmul.f32 %v1631_v37, %v1626_v59 }
0x1973   :  { %1635 = vrot.lane.b32.xlu1 %v1633_v51, %s2945_s2 }
0x19e5   :  { %v1636_v2 = vpop.permute.xlu1 %1635 }
0x19e6   :  { %v1638_v20 = vadd.f32 %v1636_v2, %v1628_v57 }
0x19e8   :  { %2833 = vtanh.f32 %v1638_v20 }
0x19f2   :  { %v2834_v45 = vpop.eup %2833 }
0x19f3   :  { %1641 = vrot.lane.b32.xlu0 %v2834_v45, %s2945_s2 }
0x1a65   :  { %v1642_v22 = vpop.permute.xlu0 %1641 }
0x1a66   :  { %v1644_v54 = vmul.f32 %v1642_v22, %v1627_v13 }
0x1a68   :  { %2363 = vmatmul.mubr.msk.f32.vlgmr.msra.gmra.mrb[26].mxu0 %vm351_vm11, %v1644_v54 }
0x1a69   :  { %2687 = vmatpush1.bf16.msra.mxu0 %v3493_v29  ;;  %1910 = vmatprep.mubr.f32.mxu0 %v2943_v7 }
0x1a6a   :  { %2689 = vmatprep.subr.bf16.mxu0 %v3498_v0 }
0x1a6d   :  { %2691 = vmatpush1.bf16.msra.mxu0 %v3500_v31 }
0x1a6e   :  { %2693 = vmatprep.subr.bf16.mxu0 %v3504_v52 }
0x1a71   :  { %2695 = vmatpush1.bf16.msra.mxu0 %v3506_v6 }
0x1a72   :  { %2697 = vmatprep.subr.bf16.mxu0 %v3510_v50 }
0x1a75   :  { %2699 = vmatpush1.bf16.msra.mxu0 %v3512_v15 }
0x1a76   :  { %2717 = vmatprep.subr.bf16.mxu0 %v3491_v35 }
0x1b3b   :  { %v1714_v43 = vpop.f32.mrb[26].mxu0 }
0x1b3c   :  { %v1719_v26 = vadd.f32 %v1714_v43, %v1341_v63  ;;  %v1716_v48 = vpop.f32.mrb[27].mxu0 }
0x1b3d   :  { %v1720_v28 = vadd.f32 %v1716_v48, %v1342_v36 }
0x1b3f   :  { %2835 = vtanh.f32 %v1720_v28 }
0x1b40   :  { %2837 = vtanh.f32 %v1719_v26 }
0x1b49   :  { %v2836_v23 = vpop.eup %2835 }
0x1b4a   :  { %v1724_v44 = vmul.f32 %v2836_v23, %v3310_v17  ;;  %v2838_v38 = vpop.eup %2837 }
0x1b4b   :  { %v1723_v11 = vmul.f32 0.5, %v2838_v38 }
0x1b4c   :  { %v1726_v35 = vadd.f32 %v1724_v44, %v3313_v19 }
0x1b4d   :  { %v1725_v42 = vadd.f32 0.5, %v1723_v11 }
0x1b4e   :  { %1729 = vrot.lane.b32.xlu1 %v1726_v35, %s2945_s2 }
0x1b4f   :  { %v1727_v32 = vmul.f32 %v1725_v42, %v1638_v20 }
0x1bc0   :  { %v1730_v63 = vpop.permute.xlu1 %1729 }
0x1bc1   :  { %v1732_v25 = vmul.f32 %v1730_v63, %v1725_v42 }
0x1bc3   :  { %1734 = vrot.lane.b32.xlu0 %v1732_v25, %s2945_s2 }
0x1c35   :  { %v1735_v13 = vpop.permute.xlu0 %1734 }
0x1c36   :  { %v1737_v4 = vadd.f32 %v1735_v13, %v1727_v32 }
0x1c38   :  { %2839 = vtanh.f32 %v1737_v4 }
0x1c42   :  { %v2840_v36 = vpop.eup %2839 }
0x1c43   :  { %1740 = vrot.lane.b32.xlu1 %v2840_v36, %s2945_s2 }
0x1cb5   :  { %v1741_v56 = vpop.permute.xlu1 %1740 }
0x1cb6   :  { %v1743_v59 = vmul.f32 %v1741_v56, %v1726_v35 }
0x1cb8   :  { %2364 = vmatmul.mubr.msk.f32.vlgmr.msra.gmra.mrb[28].mxu1 %vm351_vm11, %v1743_v59 }
0x1cb9   :  { %2703 = vmatpush1.bf16.msra.mxu1 %v3493_v29  ;;  %2009 = vmatprep.mubr.f32.mxu1 %v2943_v7 }
0x1cba   :  { %2705 = vmatprep.subr.bf16.mxu1 %v3498_v0 }
0x1cbd   :  { %2707 = vmatpush1.bf16.msra.mxu1 %v3500_v31 }
0x1cbe   :  { %2709 = vmatprep.subr.bf16.mxu1 %v3504_v52 }
0x1cc1   :  { %2711 = vmatpush1.bf16.msra.mxu1 %v3506_v6 }
0x1cc2   :  { %2713 = vmatprep.subr.bf16.mxu1 %v3510_v50 }
0x1cc5   :  { %2715 = vmatpush1.bf16.msra.mxu1 %v3512_v15 }
0x1cc6   :  { %2732 = vmatprep.subr.bf16.mxu1 %v2946_v16 }
0x1d8b   :  { %v1813_v37 = vpop.f32.mrb[28].mxu1 }
0x1d8c   :  { %v1818_v51 = vadd.f32 %v1813_v37, %v1343_v3  ;;  %v1815_v57 = vpop.f32.mrb[29].mxu1 }
0x1d8d   :  { %v1819_v2 = vadd.f32 %v1815_v57, %v1344_v5 }
0x1d8f   :  { %2841 = vtanh.f32 %v1819_v2 }
0x1d90   :  { %2843 = vtanh.f32 %v1818_v51 }
0x1d99   :  { %v2842_v20 = vpop.eup %2841 }
0x1d9a   :  { %v1823_v45 = vmul.f32 %v2842_v20, %v3310_v17  ;;  %v2844_v54 = vpop.eup %2843 }
0x1d9b   :  { %v1822_v43 = vmul.f32 0.5, %v2844_v54 }
0x1d9c   :  { %v1825_v22 = vadd.f32 %v1823_v45, %v3313_v19 }
0x1d9d   :  { %v1824_v24 = vadd.f32 0.5, %v1822_v43 }
0x1d9e   :  { %1828 = vrot.lane.b32.xlu0 %v1825_v22, %s2945_s2 }
0x1d9f   :  { %v1826_v26 = vmul.f32 %v1824_v24, %v1737_v4 }
0x1e10   :  { %v1829_v27 = vpop.permute.xlu0 %1828 }
0x1e11   :  { %v1831_v3 = vmul.f32 %v1829_v27, %v1824_v24 }
0x1e13   :  { %1833 = vrot.lane.b32.xlu1 %v1831_v3, %s2945_s2 }
0x1e85   :  { %v1834_v48 = vpop.permute.xlu1 %1833 }
0x1e86   :  { %v1836_v58 = vadd.f32 %v1834_v48, %v1826_v26  ;;  %v2145_v26 = vld [vmem:[%s3903_s6 + $0x20] sm:$0xff]  ;;  %v2146_v48 = vld [vmem:[%s3903_s6 + $0x28] sm:$0xff] }
0x1e88   :  { %2845 = vtanh.f32 %v1836_v58 }
0x1e92   :  { %v2846_v61 = vpop.eup %2845 }
0x1e93   :  { %1839 = vrot.lane.b32.xlu0 %v2846_v61, %s2945_s2  ;;  %v2147_v61 = vld [vmem:[%s3903_s6 + $0x30] sm:$0xff] }
0x1f05   :  { %v1840_v5 = vpop.permute.xlu0 %1839 }
0x1f06   :  { %v1842_v28 = vmul.f32 %v1840_v5, %v1825_v22  ;;  %v2148_v5 = vld [vmem:[%s3903_s6 + $0x38] sm:$0xff] }
0x1f08   :  { %2365 = vmatmul.mubr.msk.f32.vlgmr.msra.gmra.mrb[28].mxu0 %vm351_vm11, %v1842_v28 }
0x1f09   :  { %2719 = vmatpush1.bf16.msra.mxu0 %v3493_v29  ;;  %2108 = vmatprep.mubr.f32.mxu0 %v2943_v7 }
0x1f0a   :  { %2721 = vmatprep.subr.bf16.mxu0 %v3498_v0 }
0x1f0d   :  { %2723 = vmatpush1.bf16.msra.mxu0 %v3500_v31 }
0x1f0e   :  { %2725 = vmatprep.subr.bf16.mxu0 %v3504_v52 }
0x1f11   :  { %2727 = vmatpush1.bf16.msra.mxu0 %v3506_v6 }
0x1f12   :  { %2729 = vmatprep.subr.bf16.mxu0 %v3510_v50 }
0x1f15   :  { %2731 = vmatpush1.bf16.msra.mxu0 %v3512_v15 }
0x1f16   :  { %2744 = vmatprep.subr.bf16.mxu0 %v2946_v16 }
0x1fdb   :  { %v1912_v23 = vpop.f32.mrb[28].mxu0 }
0x1fdc   :  { %v1917_v29 = vadd.f32 %v1912_v23, %v1345_v33  ;;  %v1914_v44 = vpop.f32.mrb[29].mxu0  ;;  %v2742_v23 = vpack.c.bf16 %v2148_v5, %v2147_v61 }
0x1fdd   :  { %v1918_v0 = vadd.f32 %v1914_v44, %v1346_v34 }
0x1fdf   :  { %2847 = vtanh.f32 %v1918_v0  ;;  %v2230_v0 = vld [vmem:[%s3905_s8] sm:$0xff] }
0x1fe0   :  { %2849 = vtanh.f32 %v1917_v29 }
0x1fe9   :  { %v2848_v31 = vpop.eup %2847 }
0x1fea   :  { %v1922_v52 = vmul.f32 %v2848_v31, %v3310_v17  ;;  %v2850_v50 = vpop.eup %2849  ;;  %v2231_v31 = vld [vmem:[%s3905_s8 + $0x8] sm:$0xff] }
0x1feb   :  { %v1921_v15 = vmul.f32 0.5, %v2850_v50  ;;  %v2233_v50 = vld [vmem:[%s3905_s8 + $0x18] sm:$0xff] }
0x1fec   :  { %v1924_v6 = vadd.f32 %v1922_v52, %v3313_v19  ;;  %v2232_v52 = vld [vmem:[%s3905_s8 + $0x10] sm:$0xff] }
0x1fed   :  { %v1923_v62 = vadd.f32 0.5, %v1921_v15  ;;  %v2748_v15 = vpack.c.bf16 %v2233_v50, %v2232_v52 }
0x1fee   :  { %1927 = vrot.lane.b32.xlu1 %v1924_v6, %s2945_s2 }
0x1fef   :  { %v1925_v35 = vmul.f32 %v1923_v62, %v1836_v58  ;;  %v2739_v58 = vpack.c.bf16 %v2146_v48, %v2145_v26 }
0x2060   :  { %v1928_v30 = vpop.permute.xlu1 %1927 }
0x2061   :  { %v1930_v33 = vmul.f32 %v1928_v30, %v1923_v62  ;;  %v2235_v62 = vld [vmem:[%s3905_s8 + $0x28] sm:$0xff] }
0x2063   :  { %1932 = vrot.lane.b32.xlu0 %v1930_v33, %s2945_s2 }
0x20d5   :  { %v1933_v38 = vpop.permute.xlu0 %1932 }
0x20d6   :  { %v1935_v18 = vadd.f32 %v1933_v38, %v1925_v35 }
0x20d8   :  { %2851 = vtanh.f32 %v1935_v18 }
0x20e2   :  { %v2852_v49 = vpop.eup %2851 }
0x20e3   :  { %1938 = vrot.lane.b32.xlu1 %v2852_v49, %s2945_s2  ;;  %v2236_v49 = vld [vmem:[%s3905_s8 + $0x30] sm:$0xff] }
0x2155   :  { %v1939_v34 = vpop.permute.xlu1 %1938 }
0x2156   :  { %v1941_v11 = vmul.f32 %v1939_v34, %v1924_v6  ;;  %v2745_v6 = vpack.c.bf16 %v2231_v31, %v2230_v0  ;;  %v2237_v34 = vld [vmem:[%s3905_s8 + $0x38] sm:$0xff] }
0x2158   :  { %2366 = vmatmul.mubr.msk.f32.vlgmr.msra.gmra.mrb[30].mxu1 %vm351_vm11, %v1941_v11  ;;  %v2754_v11 = vpack.c.bf16 %v2237_v34, %v2236_v49 }
0x2159   :  { %2406 = vmatprep.mubr.msk.f32.mxu1 %vm2947_vm13, %v2943_v7 }
0x222b   :  { %v2011_v42 = vpop.f32.mrb[30].mxu1 }
0x222c   :  { %v2016_v63 = vadd.f32 %v2011_v42, %v1347_v12  ;;  %v2013_v25 = vpop.f32.mrb[31].mxu1  ;;  %v2368_v42 = vld [vmem:[%s3904_s7] ss:$0 sm:$0xff] }
0x222d   :  { %v2017_v32 = vadd.f32 %v2013_v25, %v1348_v53 }
0x222f   :  { %2853 = vtanh.f32 %v2017_v32  ;;  %v2370_v32 = vld [vmem:[#allocation2] ss:$0 sm:$0xff] }
0x2230   :  { %2855 = vtanh.f32 %v2016_v63 }
0x2239   :  { %v2854_v13 = vpop.eup %2853 }
0x223a   :  { %v2021_v4 = vmul.f32 %v2854_v13, %v3310_v17  ;;  %v2856_v56 = vpop.eup %2855 }
0x223b   :  { %v2020_v59 = vmul.f32 0.5, %v2856_v56 }
0x223c   :  { %v2023_v36 = vadd.f32 %v2021_v4, %v3313_v19 }
0x223d   :  { %v2022_v41 = vadd.f32 0.5, %v2020_v59 }
0x223e   :  { %2026 = vrot.lane.b32.xlu0 %v2023_v36, %s2945_s2 }
0x223f   :  { %v2024_v37 = vmul.f32 %v2022_v41, %v1935_v18 }
0x22b0   :  { %v2027_v10 = vpop.permute.xlu0 %2026 }
0x22b1   :  { %v2029_v12 = vmul.f32 %v2027_v10, %v2022_v41 }
0x22b3   :  { %2031 = vrot.lane.b32.xlu1 %v2029_v12, %s2945_s2 }
0x2325   :  { %v2032_v51 = vpop.permute.xlu1 %2031 }
0x2326   :  { %v2034_v40 = vadd.f32 %v2032_v51, %v2024_v37 }
0x2328   :  { %2857 = vtanh.f32 %v2034_v40 }
0x2332   :  { %v2858_v8 = vpop.eup %2857 }
0x2333   :  { %2037 = vrot.lane.b32.xlu0 %v2858_v8, %s2945_s2 }
0x23a5   :  { %v2038_v53 = vpop.permute.xlu0 %2037 }
0x23a6   :  { %v2040_v57 = vmul.f32 %v2038_v53, %v2023_v36 }
0x23a8   :  { %2367 = vmatmul.mubr.msk.f32.vlgmr.msra.gmra.mrb[30].mxu0 %vm351_vm11, %v2040_v57 }
0x23a9   :  { %2425 = vmatprep.mubr.msk.f32.mxu0 %vm2947_vm13, %v2943_v7  ;;  %2746 = vmatpush3.bf16.msra.mxu0 %v2745_v6  ;;  %v2234_v7 = vld [vmem:[%s3905_s8 + $0x20] sm:$0xff] }
0x23aa   :  { %2747 = vmatprep.subr.bf16.mxu0 %v2946_v16  ;;  %v2751_v30 = vpack.c.bf16 %v2235_v62, %v2234_v7 }
0x23ad   :  { %2749 = vmatpush3.bf16.msra.mxu0 %v2748_v15 }
0x23ae   :  { %2750 = vmatprep.subr.bf16.mxu0 %v2946_v16 }
0x23b1   :  { %2752 = vmatpush3.bf16.msra.mxu0 %v2751_v30 }
0x23b2   :  { %2753 = vmatprep.subr.bf16.mxu0 %v2946_v16 }
0x23b5   :  { %2755 = vmatpush3.bf16.msra.mxu0 %v2754_v11 }
0x247b   :  { %v2110_v2 = vpop.f32.mrb[30].mxu0 }
0x247c   :  { %v2115_v20 = vadd.f32 %v2110_v2, %v1349_v14  ;;  %v2112_v45 = vpop.f32.mrb[31].mxu0 }
0x247d   :  { %v2116_v22 = vadd.f32 %v2112_v45, %v1350_v39  ;;  %v2144_v39 = vld [vmem:[%s3903_s6 + $0x18] sm:$0xff] }
0x247f   :  { %2859 = vtanh.f32 %v2116_v22 }
0x2480   :  { %2861 = vtanh.f32 %v2115_v20 }
0x2489   :  { %v2860_v54 = vpop.eup %2859 }
0x248a   :  { %v2120_v43 = vmul.f32 %v2860_v54, %v3310_v17  ;;  %v2862_v46 = vpop.eup %2861  ;;  %v2142_v17 = vld [vmem:[%s3903_s6 + $0x8] sm:$0xff] }
0x248b   :  { %v2119_v27 = vmul.f32 0.5, %v2862_v46  ;;  %v2733_v9 = vpack.c.bf16 %v2142_v17, %v2141_v47 }
0x248c   :  { %v2122_v24 = vadd.f32 %v2120_v43, %v3313_v19  ;;  %v2143_v19 = vld [vmem:[%s3903_s6 + $0x10] sm:$0xff] }
0x248d   :  { %v2121_v60 = vadd.f32 0.5, %v2119_v27  ;;  %2734 = vmatpush3.bf16.msra.mxu1 %v2733_v9  ;;  %v2736_v3 = vpack.c.bf16 %v2144_v39, %v2143_v19 }
0x248e   :  { %2125 = vrot.lane.b32.xlu1 %v2122_v24, %s2945_s2  ;;  %2735 = vmatprep.subr.bf16.mxu1 %v2946_v16 }
0x248f   :  { %v2123_v28 = vmul.f32 %v2121_v60, %v2034_v40 }
0x2491   :  { %2737 = vmatpush3.bf16.msra.mxu1 %v2736_v3 }
0x2492   :  { %2738 = vmatprep.subr.bf16.mxu1 %v2946_v16 }
0x2495   :  { %2740 = vmatpush3.bf16.msra.mxu1 %v2739_v58 }
0x2496   :  { %2741 = vmatprep.subr.bf16.mxu1 %v2946_v16 }
0x2499   :  { %2743 = vmatpush3.bf16.msra.mxu1 %v2742_v23 }
0x2500   :  { %v2126_v1 = vpop.permute.xlu1 %2125 }
0x2501   :  { %v2128_v14 = vmul.f32 %v2126_v1, %v2121_v60 }
0x2503   :  { %2130 = vrot.lane.b32.xlu0 %v2128_v14, %s2945_s2 }
0x2575   :  { %v2131_v29 = vpop.permute.xlu0 %2130 }
0x2576   :  { %v2133_v44 = vadd.f32 %v2131_v29, %v2123_v28 }
0x2578   :  { %2863 = vtanh.f32 %v2133_v44 }
0x2582   :  { %v2864_v33 = vpop.eup %2863 }
0x2583   :  { %2136 = vrot.lane.b32.xlu1 %v2864_v33, %s2945_s2 }
0x25f5   :  { %v2137_v35 = vpop.permute.xlu1 %2136 }
0x25f6   :  { %v2139_v38 = vmul.f32 %v2137_v35, %v2122_v24 }
0x25f8   :  { %v2140_v18 = vsel %vm113_vm12, %v2139_v38, %v3688_v55 }
0x25f9   :  { %2407 = vmatmul.mubr.msk.f32.vlgmr.msra.gmra.mrb[32].mxu1 %vm351_vm11, %v2140_v18 }
0x26cc   :  { %v2225_v63 = vpop.f32.mrb[32].mxu1 }
0x26cd   :  { %v2226_v25 = vadd.f32 %v2368_v42, %v2225_v63  ;;  %v2408_v21 = vpop.f32.mrb[33].mxu1 }
0x26cf   :  { %v2229_v55 = vmax.f32 %v2226_v25, 0.0 }
0x26d1   :  { %2426 = vmatmul.mubr.msk.f32.vlgmr.msra.gmra.mrb[32].mxu0 %vm351_vm11, %v2229_v55 }
0x27a4   :  { %v2314_v13 = vpop.f32.mrb[32].mxu0 }
0x27a5   :  { %v2315_v4 = vadd.f32 %v2370_v32, %v2314_v13  ;;  %v2427_v36 = vpop.f32.mrb[33].mxu0 }
0x27a7   :  { %v2318_v56 = vmul.f32 0.5, %v2315_v4 }
0x27a9   :  { %2865 = vtanh.f32 %v2318_v56 }
0x27b3   :  { %v2866_v59 = vpop.eup %2865 }
0x27b4   :  { %v2320_v41 = vadd.f32 1.0, %v2866_v59 }
0x27b6   :  { %v2321_v10 = vmul.f32 0.5, %v2320_v41 }
0x27b8   :  { %2323 = vst.msk [vmem:[%s3907_s10] sm:$0xff] %vm2322_vm14, %v2321_v10 }
0x27b9   :  { %2328 = vsyncpa [#allocation4], 1 }
0x27ba   :  { %2329 = vsyncpa [#allocation6], 1 }

</bundles_post_ra>
